<compile_context>
chip_gen: v5e
topology: v5e:2x2
jax: 0.10.0
libtpu: 0.0.40
codegen_flags: <defaults>
</compile_context>

<pallas_src>
import functools

import numpy as np
import jax
import jax.numpy as jnp
from jax.experimental import pallas as pl
from jax.experimental.pallas import tpu as pltpu


# ----------------------------------------------------------------------------
# Pallas kernel: embedding-projection -> wavefronted LSTM stack -> maxpool ->
# block-diagonal MLP head, all on one grid point (everything in VMEM / vregs).
# ----------------------------------------------------------------------------
def _base_lstm_kernel(x_ref, wih0_ref, b0_ref, wrec_ref, brec_ref,
                      h0_ref, c0_ref, selpool_ref, w1b_ref, b1b_ref,
                      w2b_ref, b2b_ref, out_ref, *, S, L, H, Bp):
    """Whole BaseLSTM forward.

    x_ref:       (S*Bp, E)    time-major layer-0 input (embedded tokens)
    wih0_ref:    (E, 4H)      layer-0 input->gate weights, columns [i,f,o,g]
    b0_ref:      (1, 4H)      layer-0 combined bias (b_ih + b_hh)
    wrec_ref:    (L*H, L*4H)  fused recurrent / inter-layer gate weights:
                              rows [l*H:(l+1)*H] belong to layer-l hidden;
                              column block l holds whh_l on its own rows and
                              wih_l on layer (l-1)'s rows, zero elsewhere.
    brec_ref:    (1, L*4H)    combined biases for layers >= 1 (layer 0's bias
                              is folded into the hoisted input projection)
    h0/c0_ref:   (L, Bp, H)   initial states
    selpool_ref: (S*H, 4*P)   MaxPool1d(4) phase-selection matrix, P = S*H//4
    w1b/b1b:     (P, P),(1,P) block-diag Linear(H/2, H/2) (+ tiled bias)
    w2b/b2b:     (P,OP),(1,OP) block-diag Linear(H/2, O), padded to 128 lanes
    out_ref:     (Bp, OP)     per-batch-row head outputs, group-major
    """
    H3, H4 = 3 * H, 4 * H
    P = S * H // 4

    # Hoisted layer-0 input projection (bias folded in): one MXU matmul.
    xp0 = jnp.dot(x_ref[...], wih0_ref[...],
                  preferred_element_type=jnp.float32) + b0_ref[...]    # (S*Bp, 4H)

    wrec = wrec_ref[...]                                               # (L*H, L*4H)
    brec = brec_ref[...]                                               # (1, L*4H)

    h = [h0_ref[l] for l in range(L)]                                  # each (Bp, H)
    c = [c0_ref[l] for l in range(L)]
    out_h = [None] * S

    # Layer wavefront: step w runs layer l at time t = w - l (if 0 <= t < S).
    # All layers share ONE fused matmul against the start-of-step hidden stack:
    # layer l needs h_{l-1}^{t} (computed at step w-1) and h_l^{t-1} (ditto).
    for w in range(S + L - 1):
        lhs = jnp.concatenate(h, axis=1)                               # (Bp, L*H)
        gates = jnp.dot(lhs, wrec,
                        preferred_element_type=jnp.float32) + brec     # (Bp, L*4H)
        new_h, new_c = list(h), list(c)
        for l in range(L):
            t = w - l
            if t < 0 or t >= S:                                        # static guard
                continue
            g = gates[:, l * H4:(l + 1) * H4]                          # (Bp, 4H)
            if l == 0:
                g = g + xp0[t * Bp:(t + 1) * Bp, :]
            sig = jax.nn.sigmoid(g[:, :H3])                  # [i | f | o] in one call
            i_g, f_g, o_g = sig[:, :H], sig[:, H:2 * H], sig[:, 2 * H:H3]
            g_g = jnp.tanh(g[:, H3:])                        # candidate
            cc = f_g * c[l] + i_g * g_g
            hh = o_g * jnp.tanh(cc)
            new_c[l], new_h[l] = cc, hh
            if l == L - 1:
                out_h[t] = hh                                # stays in vregs
        h, c = new_h, new_c

    # ---- epilogue: dropout (identity) + MaxPool1d(4) + 2-layer MLP head ----
    seq = jnp.concatenate(out_h, axis=1)                     # (Bp, S*H), lane-dense
    phases = jnp.dot(seq, selpool_ref[...],
                     preferred_element_type=jnp.float32)     # (Bp, 4*P)
    pooled = jnp.maximum(jnp.maximum(phases[:, 0:P], phases[:, P:2 * P]),
                         jnp.maximum(phases[:, 2 * P:3 * P], phases[:, 3 * P:4 * P]))
    hid = jnp.maximum(
        jnp.dot(pooled, w1b_ref[...], preferred_element_type=jnp.float32)
        + b1b_ref[...], 0.0)
    out_ref[...] = (jnp.dot(hid, w2b_ref[...], preferred_element_type=jnp.float32)
                    + b2b_ref[...])


_VMEM = pl.BlockSpec(memory_space=pltpu.MemorySpace.VMEM)


def base_lstm_pallas(x_flat, params, h0, c0, *, S, L, H, Bp):
    opad = params["w2b"].shape[-1]
    kernel = functools.partial(_base_lstm_kernel, S=S, L=L, H=H, Bp=Bp)
    return pl.pallas_call(
        kernel,
        out_shape=jax.ShapeDtypeStruct((Bp, opad), jnp.float32),
        in_specs=[_VMEM] * 12,
        out_specs=_VMEM,
        # Footprint is <1 MiB; keep the scoped-VMEM request small so it stays
        # safe on v7x (64 MiB physical / 32 MiB default scoped) as well.
        compiler_params=pltpu.CompilerParams(vmem_limit_bytes=8 * 1024 * 1024),
        # TODO(synk): when B grows past one sublane tile, add a batch-group
        # grid axis marked "parallel" so both v7x TensorCores are used.
    )(x_flat, params["wih0"], params["b0"], params["wrec"], params["brec"],
      h0, c0, params["selpool"], params["w1b"], params["b1b"],
      params["w2b"], params["b2b"])


# ----------------------------------------------------------------------------
# Parameter init (all weight packing / padding done ONCE here, not per call)
# ----------------------------------------------------------------------------
def init_params(key, vocab_size, output_size, embedding_dim, hidden_dim,
                n_layers, seq_len):
    H, L, E, S, O = hidden_dim, n_layers, embedding_dim, seq_len, output_size
    assert H % 4 == 0, "hidden_dim must be divisible by 4 (MaxPool1d(4))"
    assert S % 2 == 0, "view(-1, H//2) per batch row needs an even seq_len"
    half = H // 2
    P = S * (H // 4)           # pooled lanes per batch row
    G = P // half              # head rows per batch row (= S // 2)

    def uniform(k, shape, scale):
        return jax.random.uniform(k, shape, jnp.float32, -scale, scale)

    keys = jax.random.split(key, 1 + 4 * L + 4)
    params = {}
    # nn.Embedding default init: N(0, 1)
    params["embedding"] = jax.random.normal(keys[0], (vocab_size, E), jnp.float32)

    # nn.LSTM init: U(-1/sqrt(H), 1/sqrt(H)); gate columns packed [i, f, o, g].
    s = 1.0 / float(H) ** 0.5
    wih_list, whh_list, b_list = [], [], []
    for l in range(L):
        in_dim = E if l == 0 else H
        k_wih, k_whh, k_bih, k_bhh = keys[1 + 4 * l: 1 + 4 * (l + 1)]
        wih_list.append(uniform(k_wih, (in_dim, 4 * H), s))
        whh_list.append(uniform(k_whh, (H, 4 * H), s))
        b_list.append(uniform(k_bih, (1, 4 * H), s) + uniform(k_bhh, (1, 4 * H), s))

    params["wih0"] = wih_list[0]                      # (E, 4H) hoisted input proj
    params["b0"] = b_list[0]                          # (1, 4H)

    # Fused recurrent / inter-layer weight for the wavefront matmul.
    wrec = jnp.zeros((L * H, L * 4 * H), jnp.float32)
    brec = jnp.zeros((1, L * 4 * H), jnp.float32)
    for l in range(L):
        cols = slice(l * 4 * H, (l + 1) * 4 * H)
        wrec = wrec.at[l * H:(l + 1) * H, cols].set(whh_list[l])
        if l > 0:
            wrec = wrec.at[(l - 1) * H:l * H, cols].set(wih_list[l])
            brec = brec.at[:, cols].set(b_list[l])
    params["wrec"], params["brec"] = wrec, brec

    # Head: Linear(H/2, H/2) -> relu -> Linear(H/2, O), U(-1/sqrt(H/2), ...)
    fs = 1.0 / float(half) ** 0.5
    kh = keys[1 + 4 * L:]
    w1 = uniform(kh[0], (half, half), fs)
    b1 = uniform(kh[1], (1, half), fs)
    w2 = uniform(kh[2], (half, O), fs)
    b2 = uniform(kh[3], (1, O), fs)

    # MaxPool1d(4) phase-selection: phases[:, r*P + k] = seq[:, 4k + r].
    sel = np.zeros((S * H, 4 * P), np.float32)
    for r in range(4):
        for kk in range(P):
            sel[4 * kk + r, r * P + kk] = 1.0
    params["selpool"] = jnp.asarray(sel)

    # Block-diagonal head weights: group j = one row of the .view(-1, H//2)
    # matrix, processed along lanes of the (Bp, P) pooled slab.  Output padded
    # to 128 lanes so the kernel's single store is lane-dense.
    opad = max(128, ((G * O + 127) // 128) * 128)
    w1b = jnp.zeros((P, P), jnp.float32)
    w2b = jnp.zeros((P, opad), jnp.float32)
    b2b = jnp.zeros((1, opad), jnp.float32)
    for j in range(G):
        w1b = w1b.at[j * half:(j + 1) * half, j * half:(j + 1) * half].set(w1)
        w2b = w2b.at[j * half:(j + 1) * half, j * O:(j + 1) * O].set(w2)
        b2b = b2b.at[:, j * O:(j + 1) * O].set(b2)
    params["w1b"] = w1b
    params["b1b"] = jnp.tile(b1, (1, G))
    params["w2b"] = w2b
    params["b2b"] = b2b

    # Raw (unfused) weights: used only by the pure-JAX reference / for shapes.
    params["raw"] = {"wih": wih_list, "whh": whh_list, "b": b_list,
                     "w1": w1, "b1": b1, "w2": w2, "b2": b2}
    return params


# ----------------------------------------------------------------------------
# Forward (eval mode): one Pallas launch + tiny XLA glue for gather / reshape
# ----------------------------------------------------------------------------
@jax.jit
def base_lstm_forward(params, text, hidden):
    """Equivalent of BaseLSTM.forward(text, hidden) in eval mode.

    text:   (B, S) int32 token ids
    hidden: (h0, c0), each (n_layers, B, H)
    returns (dense_outputs, hidden)  with dense_outputs (B*S//2, output_size)
    """
    h0_all, c0_all = hidden
    L, B, H = h0_all.shape
    S = text.shape[1]
    E = params["embedding"].shape[1]
    O = params["raw"]["w2"].shape[-1]
    G = (S * (H // 4)) // (H // 2)
    assert params["selpool"].shape[0] == S * H, "params packed for different seq_len"
    Bp = ((B + 7) // 8) * 8                          # pad batch to a sublane tile

    # Embedding gather produced directly time-major (no LSTM-input transpose).
    # TODO(synk): fold the gather into the kernel via PrefetchScalarGridSpec +
    # pl.Element row gather once a grid axis exists.
    emb_tm = jnp.take(params["embedding"], text.T, axis=0)            # (S, B, E)
    x_flat = (jnp.zeros((S, Bp, E), jnp.float32).at[:, :B, :].set(emb_tm)
              .reshape(S * Bp, E))
    h0 = jnp.zeros((L, Bp, H), jnp.float32).at[:, :B].set(h0_all)
    c0 = jnp.zeros((L, Bp, H), jnp.float32).at[:, :B].set(c0_all)
    # NOTE: padded batch rows run the recurrence on zero input/state; finite
    # garbage, sliced off below.

    out = base_lstm_pallas(x_flat, params, h0, c0, S=S, L=L, H=H, Bp=Bp)  # (Bp, OP)
    dense = out[:B, :G * O].reshape(B * G, O)
    # The reference module returns the *input* hidden tuple unchanged.
    return dense, hidden


# ----------------------------------------------------------------------------
# Pure-JAX reference (straightforward per-gate LSTM, eval-mode dropout)
# ----------------------------------------------------------------------------
def reference_forward(params, text, hidden):
    h_all, c_all = hidden
    L, B, H = h_all.shape
    S = text.shape[1]
    raw = params["raw"]
    hp = jax.lax.Precision.HIGHEST
    x = params["embedding"][text]                     # (B, S, E)
    for l in range(L):
        wih, whh, b = raw["wih"][l], raw["whh"][l], raw["b"][l]
        h, c = h_all[l], c_all[l]
        outs = []
        for t in range(S):
            g = (jnp.dot(x[:, t, :], wih, precision=hp)
                 + jnp.dot(h, whh, precision=hp) + b)
            i = jax.nn.sigmoid(g[:, 0:H])
            f = jax.nn.sigmoid(g[:, H:2 * H])
            o = jax.nn.sigmoid(g[:, 2 * H:3 * H])
            gg = jnp.tanh(g[:, 3 * H:4 * H])
            c = f * c + i * gg
            h = o * jnp.tanh(c)
            outs.append(h)
        x = jnp.stack(outs, axis=1)                   # (B, S, H)
    pooled = jnp.max(x.reshape(B, S, H // 4, 4), axis=-1)
    flat = pooled.reshape(-1, H // 2)
    d = jnp.maximum(jnp.dot(flat, raw["w1"], precision=hp) + raw["b1"], 0.0)
    return jnp.dot(d, raw["w2"], precision=hp) + raw["b2"]


# ----------------------------------------------------------------------------
# Demo
# ----------------------------------------------------------------------------
if __name__ == "__main__":
    vocab_size, output_size = 50, 3
    embedding_dim, hidden_dim, n_layers = 16, 32, 2
    batch, seq = 2, 8

    key = jax.random.PRNGKey(0)
    pkey, tkey = jax.random.split(key)

    params = init_params(pkey, vocab_size, output_size, embedding_dim,
                         hidden_dim, n_layers, seq)
    text = jax.random.randint(tkey, (batch, seq), 0, vocab_size, dtype=jnp.int32)
    # init_hidden(batch) for the unidirectional case: zeros (n_layers, B, H)
    h0 = jnp.zeros((n_layers, batch, hidden_dim), jnp.float32)
    c0 = jnp.zeros((n_layers, batch, hidden_dim), jnp.float32)

    dense_outputs, hidden_out = base_lstm_forward(params, text, (h0, c0))
    jax.block_until_ready(dense_outputs)

    expected_rows = batch * seq * (hidden_dim // 4) // (hidden_dim // 2)
    assert dense_outputs.shape == (expected_rows, output_size)
    assert bool(jnp.all(jnp.isfinite(dense_outputs)))

    ref = reference_forward(params, text, (h0, c0))
    err = float(jnp.max(jnp.abs(dense_outputs - ref)))
    assert err < 5e-2, f"kernel/reference mismatch: max abs err = {err}"
    print("KERNEL_OK")
</pallas_src>

<mosaic_0001>
module attributes {stable_mosaic.version = 11 : i64} {
  func.func @_base_lstm_kernel(%arg0: memref<64x16xf32, #tpu.memory_space<vmem>>, %arg1: memref<16x128xf32, #tpu.memory_space<vmem>>, %arg2: memref<1x128xf32, #tpu.memory_space<vmem>>, %arg3: memref<64x256xf32, #tpu.memory_space<vmem>>, %arg4: memref<1x256xf32, #tpu.memory_space<vmem>>, %arg5: memref<2x8x32xf32, #tpu.memory_space<vmem>>, %arg6: memref<2x8x32xf32, #tpu.memory_space<vmem>>, %arg7: memref<256x256xf32, #tpu.memory_space<vmem>>, %arg8: memref<64x64xf32, #tpu.memory_space<vmem>>, %arg9: memref<1x64xf32, #tpu.memory_space<vmem>>, %arg10: memref<64x128xf32, #tpu.memory_space<vmem>>, %arg11: memref<1x128xf32, #tpu.memory_space<vmem>>, %arg12: memref<8x128xf32, #tpu.memory_space<vmem>>) attributes {dimension_semantics = [], scalar_prefetch = 0 : i64, scratch_operands = 0 : i64, tpu.core_type = #tpu.core_type<tc>} {
    %c0 = arith.constant 0 : index
    %c0_0 = arith.constant 0 : index
    %0 = vector.load %arg0[%c0, %c0_0] : memref<64x16xf32, #tpu.memory_space<vmem>>, vector<64x16xf32>
    %c0_1 = arith.constant 0 : index
    %c0_2 = arith.constant 0 : index
    %1 = vector.load %arg1[%c0_1, %c0_2] : memref<16x128xf32, #tpu.memory_space<vmem>>, vector<16x128xf32>
    %cst = arith.constant dense<0.000000e+00> : vector<64x128xf32>
    %2 = tpu.matmul %0, %1, %cst {dimension_numbers = #tpu.dot_dimension_numbers<[1], [0], [0], [1], [0, 0, 1, 1], [], []>} : vector<64x16xf32>, vector<16x128xf32>, vector<64x128xf32> -> vector<64x128xf32>
    %c0_3 = arith.constant 0 : index
    %c0_4 = arith.constant 0 : index
    %3 = vector.load %arg2[%c0_3, %c0_4] : memref<1x128xf32, #tpu.memory_space<vmem>>, vector<1x128xf32>
    %4 = vector.broadcast %3 : vector<1x128xf32> to vector<64x128xf32>
    %5 = arith.addf %2, %4 : vector<64x128xf32>
    %c0_5 = arith.constant 0 : index
    %c0_6 = arith.constant 0 : index
    %6 = vector.load %arg3[%c0_5, %c0_6] : memref<64x256xf32, #tpu.memory_space<vmem>>, vector<64x256xf32>
    %c0_7 = arith.constant 0 : index
    %c0_8 = arith.constant 0 : index
    %7 = vector.load %arg4[%c0_7, %c0_8] : memref<1x256xf32, #tpu.memory_space<vmem>>, vector<1x256xf32>
    %c0_9 = arith.constant 0 : index
    %c0_10 = arith.constant 0 : index
    %c0_11 = arith.constant 0 : index
    %8 = vector.load %arg5[%c0_9, %c0_10, %c0_11] : memref<2x8x32xf32, #tpu.memory_space<vmem>>, vector<1x8x32xf32>
    %9 = vector.shape_cast %8 : vector<1x8x32xf32> to vector<8x32xf32>
    %c1 = arith.constant 1 : index
    %c0_12 = arith.constant 0 : index
    %c0_13 = arith.constant 0 : index
    %10 = vector.load %arg5[%c1, %c0_12, %c0_13] : memref<2x8x32xf32, #tpu.memory_space<vmem>>, vector<1x8x32xf32>
    %11 = vector.shape_cast %10 : vector<1x8x32xf32> to vector<8x32xf32>
    %c0_14 = arith.constant 0 : index
    %c0_15 = arith.constant 0 : index
    %c0_16 = arith.constant 0 : index
    %12 = vector.load %arg6[%c0_14, %c0_15, %c0_16] : memref<2x8x32xf32, #tpu.memory_space<vmem>>, vector<1x8x32xf32>
    %13 = vector.shape_cast %12 : vector<1x8x32xf32> to vector<8x32xf32>
    %c1_17 = arith.constant 1 : index
    %c0_18 = arith.constant 0 : index
    %c0_19 = arith.constant 0 : index
    %14 = vector.load %arg6[%c1_17, %c0_18, %c0_19] : memref<2x8x32xf32, #tpu.memory_space<vmem>>, vector<1x8x32xf32>
    %15 = vector.shape_cast %14 : vector<1x8x32xf32> to vector<8x32xf32>
    %16 = tpu.concatenate %9, %11 in 1 : vector<8x32xf32>, vector<8x32xf32> -> vector<8x64xf32>
    %cst_20 = arith.constant dense<0.000000e+00> : vector<8x256xf32>
    %17 = tpu.matmul %16, %6, %cst_20 {dimension_numbers = #tpu.dot_dimension_numbers<[1], [0], [0], [1], [0, 0, 1, 1], [], []>} : vector<8x64xf32>, vector<64x256xf32>, vector<8x256xf32> -> vector<8x256xf32>
    %18 = vector.broadcast %7 : vector<1x256xf32> to vector<8x256xf32>
    %19 = arith.addf %17, %18 : vector<8x256xf32>
    %20 = vector.extract_strided_slice %19 {offsets = [0, 0], sizes = [8, 128], strides = [1, 1]} : vector<8x256xf32> to vector<8x128xf32>
    %21 = vector.extract_strided_slice %5 {offsets = [0, 0], sizes = [8, 128], strides = [1, 1]} : vector<64x128xf32> to vector<8x128xf32>
    %22 = arith.addf %20, %21 : vector<8x128xf32>
    %23 = vector.extract_strided_slice %22 {offsets = [0, 0], sizes = [8, 96], strides = [1, 1]} : vector<8x128xf32> to vector<8x96xf32>
    %24 = arith.negf %23 : vector<8x96xf32>
    %25 = math.exp %24 : vector<8x96xf32>
    %cst_21 = arith.constant 1.000000e+00 : f32
    %26 = vector.broadcast %cst_21 : f32 to vector<8x96xf32>
    %27 = arith.addf %26, %25 : vector<8x96xf32>
    %28 = arith.divf %26, %27 : vector<8x96xf32>
    %29 = vector.extract_strided_slice %28 {offsets = [0, 0], sizes = [8, 32], strides = [1, 1]} : vector<8x96xf32> to vector<8x32xf32>
    %30 = vector.extract_strided_slice %28 {offsets = [0, 32], sizes = [8, 32], strides = [1, 1]} : vector<8x96xf32> to vector<8x32xf32>
    %31 = vector.extract_strided_slice %28 {offsets = [0, 64], sizes = [8, 32], strides = [1, 1]} : vector<8x96xf32> to vector<8x32xf32>
    %32 = vector.extract_strided_slice %22 {offsets = [0, 96], sizes = [8, 32], strides = [1, 1]} : vector<8x128xf32> to vector<8x32xf32>
    %33 = math.tanh %32 : vector<8x32xf32>
    %34 = arith.mulf %30, %13 : vector<8x32xf32>
    %35 = arith.mulf %29, %33 : vector<8x32xf32>
    %36 = arith.addf %34, %35 : vector<8x32xf32>
    %37 = math.tanh %36 : vector<8x32xf32>
    %38 = arith.mulf %31, %37 : vector<8x32xf32>
    %39 = tpu.concatenate %38, %11 in 1 : vector<8x32xf32>, vector<8x32xf32> -> vector<8x64xf32>
    %cst_22 = arith.constant dense<0.000000e+00> : vector<8x256xf32>
    %40 = tpu.matmul %39, %6, %cst_22 {dimension_numbers = #tpu.dot_dimension_numbers<[1], [0], [0], [1], [0, 0, 1, 1], [], []>} : vector<8x64xf32>, vector<64x256xf32>, vector<8x256xf32> -> vector<8x256xf32>
    %41 = vector.broadcast %7 : vector<1x256xf32> to vector<8x256xf32>
    %42 = arith.addf %40, %41 : vector<8x256xf32>
    %43 = vector.extract_strided_slice %42 {offsets = [0, 0], sizes = [8, 128], strides = [1, 1]} : vector<8x256xf32> to vector<8x128xf32>
    %44 = vector.extract_strided_slice %5 {offsets = [8, 0], sizes = [8, 128], strides = [1, 1]} : vector<64x128xf32> to vector<8x128xf32>
    %45 = arith.addf %43, %44 : vector<8x128xf32>
    %46 = vector.extract_strided_slice %45 {offsets = [0, 0], sizes = [8, 96], strides = [1, 1]} : vector<8x128xf32> to vector<8x96xf32>
    %47 = arith.negf %46 : vector<8x96xf32>
    %48 = math.exp %47 : vector<8x96xf32>
    %cst_23 = arith.constant 1.000000e+00 : f32
    %49 = vector.broadcast %cst_23 : f32 to vector<8x96xf32>
    %50 = arith.addf %49, %48 : vector<8x96xf32>
    %51 = arith.divf %49, %50 : vector<8x96xf32>
    %52 = vector.extract_strided_slice %51 {offsets = [0, 0], sizes = [8, 32], strides = [1, 1]} : vector<8x96xf32> to vector<8x32xf32>
    %53 = vector.extract_strided_slice %51 {offsets = [0, 32], sizes = [8, 32], strides = [1, 1]} : vector<8x96xf32> to vector<8x32xf32>
    %54 = vector.extract_strided_slice %51 {offsets = [0, 64], sizes = [8, 32], strides = [1, 1]} : vector<8x96xf32> to vector<8x32xf32>
    %55 = vector.extract_strided_slice %45 {offsets = [0, 96], sizes = [8, 32], strides = [1, 1]} : vector<8x128xf32> to vector<8x32xf32>
    %56 = math.tanh %55 : vector<8x32xf32>
    %57 = arith.mulf %53, %36 : vector<8x32xf32>
    %58 = arith.mulf %52, %56 : vector<8x32xf32>
    %59 = arith.addf %57, %58 : vector<8x32xf32>
    %60 = math.tanh %59 : vector<8x32xf32>
    %61 = arith.mulf %54, %60 : vector<8x32xf32>
    %62 = vector.extract_strided_slice %42 {offsets = [0, 128], sizes = [8, 128], strides = [1, 1]} : vector<8x256xf32> to vector<8x128xf32>
    %63 = vector.extract_strided_slice %62 {offsets = [0, 0], sizes = [8, 96], strides = [1, 1]} : vector<8x128xf32> to vector<8x96xf32>
    %64 = arith.negf %63 : vector<8x96xf32>
    %65 = math.exp %64 : vector<8x96xf32>
    %cst_24 = arith.constant 1.000000e+00 : f32
    %66 = vector.broadcast %cst_24 : f32 to vector<8x96xf32>
    %67 = arith.addf %66, %65 : vector<8x96xf32>
    %68 = arith.divf %66, %67 : vector<8x96xf32>
    %69 = vector.extract_strided_slice %68 {offsets = [0, 0], sizes = [8, 32], strides = [1, 1]} : vector<8x96xf32> to vector<8x32xf32>
    %70 = vector.extract_strided_slice %68 {offsets = [0, 32], sizes = [8, 32], strides = [1, 1]} : vector<8x96xf32> to vector<8x32xf32>
    %71 = vector.extract_strided_slice %68 {offsets = [0, 64], sizes = [8, 32], strides = [1, 1]} : vector<8x96xf32> to vector<8x32xf32>
    %72 = vector.extract_strided_slice %62 {offsets = [0, 96], sizes = [8, 32], strides = [1, 1]} : vector<8x128xf32> to vector<8x32xf32>
    %73 = math.tanh %72 : vector<8x32xf32>
    %74 = arith.mulf %70, %15 : vector<8x32xf32>
    %75 = arith.mulf %69, %73 : vector<8x32xf32>
    %76 = arith.addf %74, %75 : vector<8x32xf32>
    %77 = math.tanh %76 : vector<8x32xf32>
    %78 = arith.mulf %71, %77 : vector<8x32xf32>
    %79 = tpu.concatenate %61, %78 in 1 : vector<8x32xf32>, vector<8x32xf32> -> vector<8x64xf32>
    %cst_25 = arith.constant dense<0.000000e+00> : vector<8x256xf32>
    %80 = tpu.matmul %79, %6, %cst_25 {dimension_numbers = #tpu.dot_dimension_numbers<[1], [0], [0], [1], [0, 0, 1, 1], [], []>} : vector<8x64xf32>, vector<64x256xf32>, vector<8x256xf32> -> vector<8x256xf32>
    %81 = vector.broadcast %7 : vector<1x256xf32> to vector<8x256xf32>
    %82 = arith.addf %80, %81 : vector<8x256xf32>
    %83 = vector.extract_strided_slice %82 {offsets = [0, 0], sizes = [8, 128], strides = [1, 1]} : vector<8x256xf32> to vector<8x128xf32>
    %84 = vector.extract_strided_slice %5 {offsets = [16, 0], sizes = [8, 128], strides = [1, 1]} : vector<64x128xf32> to vector<8x128xf32>
    %85 = arith.addf %83, %84 : vector<8x128xf32>
    %86 = vector.extract_strided_slice %85 {offsets = [0, 0], sizes = [8, 96], strides = [1, 1]} : vector<8x128xf32> to vector<8x96xf32>
    %87 = arith.negf %86 : vector<8x96xf32>
    %88 = math.exp %87 : vector<8x96xf32>
    %cst_26 = arith.constant 1.000000e+00 : f32
    %89 = vector.broadcast %cst_26 : f32 to vector<8x96xf32>
    %90 = arith.addf %89, %88 : vector<8x96xf32>
    %91 = arith.divf %89, %90 : vector<8x96xf32>
    %92 = vector.extract_strided_slice %91 {offsets = [0, 0], sizes = [8, 32], strides = [1, 1]} : vector<8x96xf32> to vector<8x32xf32>
    %93 = vector.extract_strided_slice %91 {offsets = [0, 32], sizes = [8, 32], strides = [1, 1]} : vector<8x96xf32> to vector<8x32xf32>
    %94 = vector.extract_strided_slice %91 {offsets = [0, 64], sizes = [8, 32], strides = [1, 1]} : vector<8x96xf32> to vector<8x32xf32>
    %95 = vector.extract_strided_slice %85 {offsets = [0, 96], sizes = [8, 32], strides = [1, 1]} : vector<8x128xf32> to vector<8x32xf32>
    %96 = math.tanh %95 : vector<8x32xf32>
    %97 = arith.mulf %93, %59 : vector<8x32xf32>
    %98 = arith.mulf %92, %96 : vector<8x32xf32>
    %99 = arith.addf %97, %98 : vector<8x32xf32>
    %100 = math.tanh %99 : vector<8x32xf32>
    %101 = arith.mulf %94, %100 : vector<8x32xf32>
    %102 = vector.extract_strided_slice %82 {offsets = [0, 128], sizes = [8, 128], strides = [1, 1]} : vector<8x256xf32> to vector<8x128xf32>
    %103 = vector.extract_strided_slice %102 {offsets = [0, 0], sizes = [8, 96], strides = [1, 1]} : vector<8x128xf32> to vector<8x96xf32>
    %104 = arith.negf %103 : vector<8x96xf32>
    %105 = math.exp %104 : vector<8x96xf32>
    %cst_27 = arith.constant 1.000000e+00 : f32
    %106 = vector.broadcast %cst_27 : f32 to vector<8x96xf32>
    %107 = arith.addf %106, %105 : vector<8x96xf32>
    %108 = arith.divf %106, %107 : vector<8x96xf32>
    %109 = vector.extract_strided_slice %108 {offsets = [0, 0], sizes = [8, 32], strides = [1, 1]} : vector<8x96xf32> to vector<8x32xf32>
    %110 = vector.extract_strided_slice %108 {offsets = [0, 32], sizes = [8, 32], strides = [1, 1]} : vector<8x96xf32> to vector<8x32xf32>
    %111 = vector.extract_strided_slice %108 {offsets = [0, 64], sizes = [8, 32], strides = [1, 1]} : vector<8x96xf32> to vector<8x32xf32>
    %112 = vector.extract_strided_slice %102 {offsets = [0, 96], sizes = [8, 32], strides = [1, 1]} : vector<8x128xf32> to vector<8x32xf32>
    %113 = math.tanh %112 : vector<8x32xf32>
    %114 = arith.mulf %110, %76 : vector<8x32xf32>
    %115 = arith.mulf %109, %113 : vector<8x32xf32>
    %116 = arith.addf %114, %115 : vector<8x32xf32>
    %117 = math.tanh %116 : vector<8x32xf32>
    %118 = arith.mulf %111, %117 : vector<8x32xf32>
    %119 = tpu.concatenate %101, %118 in 1 : vector<8x32xf32>, vector<8x32xf32> -> vector<8x64xf32>
    %cst_28 = arith.constant dense<0.000000e+00> : vector<8x256xf32>
    %120 = tpu.matmul %119, %6, %cst_28 {dimension_numbers = #tpu.dot_dimension_numbers<[1], [0], [0], [1], [0, 0, 1, 1], [], []>} : vector<8x64xf32>, vector<64x256xf32>, vector<8x256xf32> -> vector<8x256xf32>
    %121 = vector.broadcast %7 : vector<1x256xf32> to vector<8x256xf32>
    %122 = arith.addf %120, %121 : vector<8x256xf32>
    %123 = vector.extract_strided_slice %122 {offsets = [0, 0], sizes = [8, 128], strides = [1, 1]} : vector<8x256xf32> to vector<8x128xf32>
    %124 = vector.extract_strided_slice %5 {offsets = [24, 0], sizes = [8, 128], strides = [1, 1]} : vector<64x128xf32> to vector<8x128xf32>
    %125 = arith.addf %123, %124 : vector<8x128xf32>
    %126 = vector.extract_strided_slice %125 {offsets = [0, 0], sizes = [8, 96], strides = [1, 1]} : vector<8x128xf32> to vector<8x96xf32>
    %127 = arith.negf %126 : vector<8x96xf32>
    %128 = math.exp %127 : vector<8x96xf32>
    %cst_29 = arith.constant 1.000000e+00 : f32
    %129 = vector.broadcast %cst_29 : f32 to vector<8x96xf32>
    %130 = arith.addf %129, %128 : vector<8x96xf32>
    %131 = arith.divf %129, %130 : vector<8x96xf32>
    %132 = vector.extract_strided_slice %131 {offsets = [0, 0], sizes = [8, 32], strides = [1, 1]} : vector<8x96xf32> to vector<8x32xf32>
    %133 = vector.extract_strided_slice %131 {offsets = [0, 32], sizes = [8, 32], strides = [1, 1]} : vector<8x96xf32> to vector<8x32xf32>
    %134 = vector.extract_strided_slice %131 {offsets = [0, 64], sizes = [8, 32], strides = [1, 1]} : vector<8x96xf32> to vector<8x32xf32>
    %135 = vector.extract_strided_slice %125 {offsets = [0, 96], sizes = [8, 32], strides = [1, 1]} : vector<8x128xf32> to vector<8x32xf32>
    %136 = math.tanh %135 : vector<8x32xf32>
    %137 = arith.mulf %133, %99 : vector<8x32xf32>
    %138 = arith.mulf %132, %136 : vector<8x32xf32>
    %139 = arith.addf %137, %138 : vector<8x32xf32>
    %140 = math.tanh %139 : vector<8x32xf32>
    %141 = arith.mulf %134, %140 : vector<8x32xf32>
    %142 = vector.extract_strided_slice %122 {offsets = [0, 128], sizes = [8, 128], strides = [1, 1]} : vector<8x256xf32> to vector<8x128xf32>
    %143 = vector.extract_strided_slice %142 {offsets = [0, 0], sizes = [8, 96], strides = [1, 1]} : vector<8x128xf32> to vector<8x96xf32>
    %144 = arith.negf %143 : vector<8x96xf32>
    %145 = math.exp %144 : vector<8x96xf32>
    %cst_30 = arith.constant 1.000000e+00 : f32
    %146 = vector.broadcast %cst_30 : f32 to vector<8x96xf32>
    %147 = arith.addf %146, %145 : vector<8x96xf32>
    %148 = arith.divf %146, %147 : vector<8x96xf32>
    %149 = vector.extract_strided_slice %148 {offsets = [0, 0], sizes = [8, 32], strides = [1, 1]} : vector<8x96xf32> to vector<8x32xf32>
    %150 = vector.extract_strided_slice %148 {offsets = [0, 32], sizes = [8, 32], strides = [1, 1]} : vector<8x96xf32> to vector<8x32xf32>
    %151 = vector.extract_strided_slice %148 {offsets = [0, 64], sizes = [8, 32], strides = [1, 1]} : vector<8x96xf32> to vector<8x32xf32>
    %152 = vector.extract_strided_slice %142 {offsets = [0, 96], sizes = [8, 32], strides = [1, 1]} : vector<8x128xf32> to vector<8x32xf32>
    %153 = math.tanh %152 : vector<8x32xf32>
    %154 = arith.mulf %150, %116 : vector<8x32xf32>
    %155 = arith.mulf %149, %153 : vector<8x32xf32>
    %156 = arith.addf %154, %155 : vector<8x32xf32>
    %157 = math.tanh %156 : vector<8x32xf32>
    %158 = arith.mulf %151, %157 : vector<8x32xf32>
    %159 = tpu.concatenate %141, %158 in 1 : vector<8x32xf32>, vector<8x32xf32> -> vector<8x64xf32>
    %cst_31 = arith.constant dense<0.000000e+00> : vector<8x256xf32>
    %160 = tpu.matmul %159, %6, %cst_31 {dimension_numbers = #tpu.dot_dimension_numbers<[1], [0], [0], [1], [0, 0, 1, 1], [], []>} : vector<8x64xf32>, vector<64x256xf32>, vector<8x256xf32> -> vector<8x256xf32>
    %161 = vector.broadcast %7 : vector<1x256xf32> to vector<8x256xf32>
    %162 = arith.addf %160, %161 : vector<8x256xf32>
    %163 = vector.extract_strided_slice %162 {offsets = [0, 0], sizes = [8, 128], strides = [1, 1]} : vector<8x256xf32> to vector<8x128xf32>
    %164 = vector.extract_strided_slice %5 {offsets = [32, 0], sizes = [8, 128], strides = [1, 1]} : vector<64x128xf32> to vector<8x128xf32>
    %165 = arith.addf %163, %164 : vector<8x128xf32>
    %166 = vector.extract_strided_slice %165 {offsets = [0, 0], sizes = [8, 96], strides = [1, 1]} : vector<8x128xf32> to vector<8x96xf32>
    %167 = arith.negf %166 : vector<8x96xf32>
    %168 = math.exp %167 : vector<8x96xf32>
    %cst_32 = arith.constant 1.000000e+00 : f32
    %169 = vector.broadcast %cst_32 : f32 to vector<8x96xf32>
    %170 = arith.addf %169, %168 : vector<8x96xf32>
    %171 = arith.divf %169, %170 : vector<8x96xf32>
    %172 = vector.extract_strided_slice %171 {offsets = [0, 0], sizes = [8, 32], strides = [1, 1]} : vector<8x96xf32> to vector<8x32xf32>
    %173 = vector.extract_strided_slice %171 {offsets = [0, 32], sizes = [8, 32], strides = [1, 1]} : vector<8x96xf32> to vector<8x32xf32>
    %174 = vector.extract_strided_slice %171 {offsets = [0, 64], sizes = [8, 32], strides = [1, 1]} : vector<8x96xf32> to vector<8x32xf32>
    %175 = vector.extract_strided_slice %165 {offsets = [0, 96], sizes = [8, 32], strides = [1, 1]} : vector<8x128xf32> to vector<8x32xf32>
    %176 = math.tanh %175 : vector<8x32xf32>
    %177 = arith.mulf %173, %139 : vector<8x32xf32>
    %178 = arith.mulf %172, %176 : vector<8x32xf32>
    %179 = arith.addf %177, %178 : vector<8x32xf32>
    %180 = math.tanh %179 : vector<8x32xf32>
    %181 = arith.mulf %174, %180 : vector<8x32xf32>
    %182 = vector.extract_strided_slice %162 {offsets = [0, 128], sizes = [8, 128], strides = [1, 1]} : vector<8x256xf32> to vector<8x128xf32>
    %183 = vector.extract_strided_slice %182 {offsets = [0, 0], sizes = [8, 96], strides = [1, 1]} : vector<8x128xf32> to vector<8x96xf32>
    %184 = arith.negf %183 : vector<8x96xf32>
    %185 = math.exp %184 : vector<8x96xf32>
    %cst_33 = arith.constant 1.000000e+00 : f32
    %186 = vector.broadcast %cst_33 : f32 to vector<8x96xf32>
    %187 = arith.addf %186, %185 : vector<8x96xf32>
    %188 = arith.divf %186, %187 : vector<8x96xf32>
    %189 = vector.extract_strided_slice %188 {offsets = [0, 0], sizes = [8, 32], strides = [1, 1]} : vector<8x96xf32> to vector<8x32xf32>
    %190 = vector.extract_strided_slice %188 {offsets = [0, 32], sizes = [8, 32], strides = [1, 1]} : vector<8x96xf32> to vector<8x32xf32>
    %191 = vector.extract_strided_slice %188 {offsets = [0, 64], sizes = [8, 32], strides = [1, 1]} : vector<8x96xf32> to vector<8x32xf32>
    %192 = vector.extract_strided_slice %182 {offsets = [0, 96], sizes = [8, 32], strides = [1, 1]} : vector<8x128xf32> to vector<8x32xf32>
    %193 = math.tanh %192 : vector<8x32xf32>
    %194 = arith.mulf %190, %156 : vector<8x32xf32>
    %195 = arith.mulf %189, %193 : vector<8x32xf32>
    %196 = arith.addf %194, %195 : vector<8x32xf32>
    %197 = math.tanh %196 : vector<8x32xf32>
    %198 = arith.mulf %191, %197 : vector<8x32xf32>
    %199 = tpu.concatenate %181, %198 in 1 : vector<8x32xf32>, vector<8x32xf32> -> vector<8x64xf32>
    %cst_34 = arith.constant dense<0.000000e+00> : vector<8x256xf32>
    %200 = tpu.matmul %199, %6, %cst_34 {dimension_numbers = #tpu.dot_dimension_numbers<[1], [0], [0], [1], [0, 0, 1, 1], [], []>} : vector<8x64xf32>, vector<64x256xf32>, vector<8x256xf32> -> vector<8x256xf32>
    %201 = vector.broadcast %7 : vector<1x256xf32> to vector<8x256xf32>
    %202 = arith.addf %200, %201 : vector<8x256xf32>
    %203 = vector.extract_strided_slice %202 {offsets = [0, 0], sizes = [8, 128], strides = [1, 1]} : vector<8x256xf32> to vector<8x128xf32>
    %204 = vector.extract_strided_slice %5 {offsets = [40, 0], sizes = [8, 128], strides = [1, 1]} : vector<64x128xf32> to vector<8x128xf32>
    %205 = arith.addf %203, %204 : vector<8x128xf32>
    %206 = vector.extract_strided_slice %205 {offsets = [0, 0], sizes = [8, 96], strides = [1, 1]} : vector<8x128xf32> to vector<8x96xf32>
    %207 = arith.negf %206 : vector<8x96xf32>
    %208 = math.exp %207 : vector<8x96xf32>
    %cst_35 = arith.constant 1.000000e+00 : f32
    %209 = vector.broadcast %cst_35 : f32 to vector<8x96xf32>
    %210 = arith.addf %209, %208 : vector<8x96xf32>
    %211 = arith.divf %209, %210 : vector<8x96xf32>
    %212 = vector.extract_strided_slice %211 {offsets = [0, 0], sizes = [8, 32], strides = [1, 1]} : vector<8x96xf32> to vector<8x32xf32>
    %213 = vector.extract_strided_slice %211 {offsets = [0, 32], sizes = [8, 32], strides = [1, 1]} : vector<8x96xf32> to vector<8x32xf32>
    %214 = vector.extract_strided_slice %211 {offsets = [0, 64], sizes = [8, 32], strides = [1, 1]} : vector<8x96xf32> to vector<8x32xf32>
    %215 = vector.extract_strided_slice %205 {offsets = [0, 96], sizes = [8, 32], strides = [1, 1]} : vector<8x128xf32> to vector<8x32xf32>
    %216 = math.tanh %215 : vector<8x32xf32>
    %217 = arith.mulf %213, %179 : vector<8x32xf32>
    %218 = arith.mulf %212, %216 : vector<8x32xf32>
    %219 = arith.addf %217, %218 : vector<8x32xf32>
    %220 = math.tanh %219 : vector<8x32xf32>
    %221 = arith.mulf %214, %220 : vector<8x32xf32>
    %222 = vector.extract_strided_slice %202 {offsets = [0, 128], sizes = [8, 128], strides = [1, 1]} : vector<8x256xf32> to vector<8x128xf32>
    %223 = vector.extract_strided_slice %222 {offsets = [0, 0], sizes = [8, 96], strides = [1, 1]} : vector<8x128xf32> to vector<8x96xf32>
    %224 = arith.negf %223 : vector<8x96xf32>
    %225 = math.exp %224 : vector<8x96xf32>
    %cst_36 = arith.constant 1.000000e+00 : f32
    %226 = vector.broadcast %cst_36 : f32 to vector<8x96xf32>
    %227 = arith.addf %226, %225 : vector<8x96xf32>
    %228 = arith.divf %226, %227 : vector<8x96xf32>
    %229 = vector.extract_strided_slice %228 {offsets = [0, 0], sizes = [8, 32], strides = [1, 1]} : vector<8x96xf32> to vector<8x32xf32>
    %230 = vector.extract_strided_slice %228 {offsets = [0, 32], sizes = [8, 32], strides = [1, 1]} : vector<8x96xf32> to vector<8x32xf32>
    %231 = vector.extract_strided_slice %228 {offsets = [0, 64], sizes = [8, 32], strides = [1, 1]} : vector<8x96xf32> to vector<8x32xf32>
    %232 = vector.extract_strided_slice %222 {offsets = [0, 96], sizes = [8, 32], strides = [1, 1]} : vector<8x128xf32> to vector<8x32xf32>
    %233 = math.tanh %232 : vector<8x32xf32>
    %234 = arith.mulf %230, %196 : vector<8x32xf32>
    %235 = arith.mulf %229, %233 : vector<8x32xf32>
    %236 = arith.addf %234, %235 : vector<8x32xf32>
    %237 = math.tanh %236 : vector<8x32xf32>
    %238 = arith.mulf %231, %237 : vector<8x32xf32>
    %239 = tpu.concatenate %221, %238 in 1 : vector<8x32xf32>, vector<8x32xf32> -> vector<8x64xf32>
    %cst_37 = arith.constant dense<0.000000e+00> : vector<8x256xf32>
    %240 = tpu.matmul %239, %6, %cst_37 {dimension_numbers = #tpu.dot_dimension_numbers<[1], [0], [0], [1], [0, 0, 1, 1], [], []>} : vector<8x64xf32>, vector<64x256xf32>, vector<8x256xf32> -> vector<8x256xf32>
    %241 = vector.broadcast %7 : vector<1x256xf32> to vector<8x256xf32>
    %242 = arith.addf %240, %241 : vector<8x256xf32>
    %243 = vector.extract_strided_slice %242 {offsets = [0, 0], sizes = [8, 128], strides = [1, 1]} : vector<8x256xf32> to vector<8x128xf32>
    %244 = vector.extract_strided_slice %5 {offsets = [48, 0], sizes = [8, 128], strides = [1, 1]} : vector<64x128xf32> to vector<8x128xf32>
    %245 = arith.addf %243, %244 : vector<8x128xf32>
    %246 = vector.extract_strided_slice %245 {offsets = [0, 0], sizes = [8, 96], strides = [1, 1]} : vector<8x128xf32> to vector<8x96xf32>
    %247 = arith.negf %246 : vector<8x96xf32>
    %248 = math.exp %247 : vector<8x96xf32>
    %cst_38 = arith.constant 1.000000e+00 : f32
    %249 = vector.broadcast %cst_38 : f32 to vector<8x96xf32>
    %250 = arith.addf %249, %248 : vector<8x96xf32>
    %251 = arith.divf %249, %250 : vector<8x96xf32>
    %252 = vector.extract_strided_slice %251 {offsets = [0, 0], sizes = [8, 32], strides = [1, 1]} : vector<8x96xf32> to vector<8x32xf32>
    %253 = vector.extract_strided_slice %251 {offsets = [0, 32], sizes = [8, 32], strides = [1, 1]} : vector<8x96xf32> to vector<8x32xf32>
    %254 = vector.extract_strided_slice %251 {offsets = [0, 64], sizes = [8, 32], strides = [1, 1]} : vector<8x96xf32> to vector<8x32xf32>
    %255 = vector.extract_strided_slice %245 {offsets = [0, 96], sizes = [8, 32], strides = [1, 1]} : vector<8x128xf32> to vector<8x32xf32>
    %256 = math.tanh %255 : vector<8x32xf32>
    %257 = arith.mulf %253, %219 : vector<8x32xf32>
    %258 = arith.mulf %252, %256 : vector<8x32xf32>
    %259 = arith.addf %257, %258 : vector<8x32xf32>
    %260 = math.tanh %259 : vector<8x32xf32>
    %261 = arith.mulf %254, %260 : vector<8x32xf32>
    %262 = vector.extract_strided_slice %242 {offsets = [0, 128], sizes = [8, 128], strides = [1, 1]} : vector<8x256xf32> to vector<8x128xf32>
    %263 = vector.extract_strided_slice %262 {offsets = [0, 0], sizes = [8, 96], strides = [1, 1]} : vector<8x128xf32> to vector<8x96xf32>
    %264 = arith.negf %263 : vector<8x96xf32>
    %265 = math.exp %264 : vector<8x96xf32>
    %cst_39 = arith.constant 1.000000e+00 : f32
    %266 = vector.broadcast %cst_39 : f32 to vector<8x96xf32>
    %267 = arith.addf %266, %265 : vector<8x96xf32>
    %268 = arith.divf %266, %267 : vector<8x96xf32>
    %269 = vector.extract_strided_slice %268 {offsets = [0, 0], sizes = [8, 32], strides = [1, 1]} : vector<8x96xf32> to vector<8x32xf32>
    %270 = vector.extract_strided_slice %268 {offsets = [0, 32], sizes = [8, 32], strides = [1, 1]} : vector<8x96xf32> to vector<8x32xf32>
    %271 = vector.extract_strided_slice %268 {offsets = [0, 64], sizes = [8, 32], strides = [1, 1]} : vector<8x96xf32> to vector<8x32xf32>
    %272 = vector.extract_strided_slice %262 {offsets = [0, 96], sizes = [8, 32], strides = [1, 1]} : vector<8x128xf32> to vector<8x32xf32>
    %273 = math.tanh %272 : vector<8x32xf32>
    %274 = arith.mulf %270, %236 : vector<8x32xf32>
    %275 = arith.mulf %269, %273 : vector<8x32xf32>
    %276 = arith.addf %274, %275 : vector<8x32xf32>
    %277 = math.tanh %276 : vector<8x32xf32>
    %278 = arith.mulf %271, %277 : vector<8x32xf32>
    %279 = tpu.concatenate %261, %278 in 1 : vector<8x32xf32>, vector<8x32xf32> -> vector<8x64xf32>
    %cst_40 = arith.constant dense<0.000000e+00> : vector<8x256xf32>
    %280 = tpu.matmul %279, %6, %cst_40 {dimension_numbers = #tpu.dot_dimension_numbers<[1], [0], [0], [1], [0, 0, 1, 1], [], []>} : vector<8x64xf32>, vector<64x256xf32>, vector<8x256xf32> -> vector<8x256xf32>
    %281 = vector.broadcast %7 : vector<1x256xf32> to vector<8x256xf32>
    %282 = arith.addf %280, %281 : vector<8x256xf32>
    %283 = vector.extract_strided_slice %282 {offsets = [0, 0], sizes = [8, 128], strides = [1, 1]} : vector<8x256xf32> to vector<8x128xf32>
    %284 = vector.extract_strided_slice %5 {offsets = [56, 0], sizes = [8, 128], strides = [1, 1]} : vector<64x128xf32> to vector<8x128xf32>
    %285 = arith.addf %283, %284 : vector<8x128xf32>
    %286 = vector.extract_strided_slice %285 {offsets = [0, 0], sizes = [8, 96], strides = [1, 1]} : vector<8x128xf32> to vector<8x96xf32>
    %287 = arith.negf %286 : vector<8x96xf32>
    %288 = math.exp %287 : vector<8x96xf32>
    %cst_41 = arith.constant 1.000000e+00 : f32
    %289 = vector.broadcast %cst_41 : f32 to vector<8x96xf32>
    %290 = arith.addf %289, %288 : vector<8x96xf32>
    %291 = arith.divf %289, %290 : vector<8x96xf32>
    %292 = vector.extract_strided_slice %291 {offsets = [0, 0], sizes = [8, 32], strides = [1, 1]} : vector<8x96xf32> to vector<8x32xf32>
    %293 = vector.extract_strided_slice %291 {offsets = [0, 32], sizes = [8, 32], strides = [1, 1]} : vector<8x96xf32> to vector<8x32xf32>
    %294 = vector.extract_strided_slice %291 {offsets = [0, 64], sizes = [8, 32], strides = [1, 1]} : vector<8x96xf32> to vector<8x32xf32>
    %295 = vector.extract_strided_slice %285 {offsets = [0, 96], sizes = [8, 32], strides = [1, 1]} : vector<8x128xf32> to vector<8x32xf32>
    %296 = math.tanh %295 : vector<8x32xf32>
    %297 = arith.mulf %293, %259 : vector<8x32xf32>
    %298 = arith.mulf %292, %296 : vector<8x32xf32>
    %299 = arith.addf %297, %298 : vector<8x32xf32>
    %300 = math.tanh %299 : vector<8x32xf32>
    %301 = arith.mulf %294, %300 : vector<8x32xf32>
    %302 = vector.extract_strided_slice %282 {offsets = [0, 128], sizes = [8, 128], strides = [1, 1]} : vector<8x256xf32> to vector<8x128xf32>
    %303 = vector.extract_strided_slice %302 {offsets = [0, 0], sizes = [8, 96], strides = [1, 1]} : vector<8x128xf32> to vector<8x96xf32>
    %304 = arith.negf %303 : vector<8x96xf32>
    %305 = math.exp %304 : vector<8x96xf32>
    %cst_42 = arith.constant 1.000000e+00 : f32
    %306 = vector.broadcast %cst_42 : f32 to vector<8x96xf32>
    %307 = arith.addf %306, %305 : vector<8x96xf32>
    %308 = arith.divf %306, %307 : vector<8x96xf32>
    %309 = vector.extract_strided_slice %308 {offsets = [0, 0], sizes = [8, 32], strides = [1, 1]} : vector<8x96xf32> to vector<8x32xf32>
    %310 = vector.extract_strided_slice %308 {offsets = [0, 32], sizes = [8, 32], strides = [1, 1]} : vector<8x96xf32> to vector<8x32xf32>
    %311 = vector.extract_strided_slice %308 {offsets = [0, 64], sizes = [8, 32], strides = [1, 1]} : vector<8x96xf32> to vector<8x32xf32>
    %312 = vector.extract_strided_slice %302 {offsets = [0, 96], sizes = [8, 32], strides = [1, 1]} : vector<8x128xf32> to vector<8x32xf32>
    %313 = math.tanh %312 : vector<8x32xf32>
    %314 = arith.mulf %310, %276 : vector<8x32xf32>
    %315 = arith.mulf %309, %313 : vector<8x32xf32>
    %316 = arith.addf %314, %315 : vector<8x32xf32>
    %317 = math.tanh %316 : vector<8x32xf32>
    %318 = arith.mulf %311, %317 : vector<8x32xf32>
    %319 = tpu.concatenate %301, %318 in 1 : vector<8x32xf32>, vector<8x32xf32> -> vector<8x64xf32>
    %cst_43 = arith.constant dense<0.000000e+00> : vector<8x256xf32>
    %320 = tpu.matmul %319, %6, %cst_43 {dimension_numbers = #tpu.dot_dimension_numbers<[1], [0], [0], [1], [0, 0, 1, 1], [], []>} : vector<8x64xf32>, vector<64x256xf32>, vector<8x256xf32> -> vector<8x256xf32>
    %321 = vector.broadcast %7 : vector<1x256xf32> to vector<8x256xf32>
    %322 = arith.addf %320, %321 : vector<8x256xf32>
    %323 = vector.extract_strided_slice %322 {offsets = [0, 128], sizes = [8, 128], strides = [1, 1]} : vector<8x256xf32> to vector<8x128xf32>
    %324 = vector.extract_strided_slice %323 {offsets = [0, 0], sizes = [8, 96], strides = [1, 1]} : vector<8x128xf32> to vector<8x96xf32>
    %325 = arith.negf %324 : vector<8x96xf32>
    %326 = math.exp %325 : vector<8x96xf32>
    %cst_44 = arith.constant 1.000000e+00 : f32
    %327 = vector.broadcast %cst_44 : f32 to vector<8x96xf32>
    %328 = arith.addf %327, %326 : vector<8x96xf32>
    %329 = arith.divf %327, %328 : vector<8x96xf32>
    %330 = vector.extract_strided_slice %329 {offsets = [0, 0], sizes = [8, 32], strides = [1, 1]} : vector<8x96xf32> to vector<8x32xf32>
    %331 = vector.extract_strided_slice %329 {offsets = [0, 32], sizes = [8, 32], strides = [1, 1]} : vector<8x96xf32> to vector<8x32xf32>
    %332 = vector.extract_strided_slice %329 {offsets = [0, 64], sizes = [8, 32], strides = [1, 1]} : vector<8x96xf32> to vector<8x32xf32>
    %333 = vector.extract_strided_slice %323 {offsets = [0, 96], sizes = [8, 32], strides = [1, 1]} : vector<8x128xf32> to vector<8x32xf32>
    %334 = math.tanh %333 : vector<8x32xf32>
    %335 = arith.mulf %331, %316 : vector<8x32xf32>
    %336 = arith.mulf %330, %334 : vector<8x32xf32>
    %337 = arith.addf %335, %336 : vector<8x32xf32>
    %338 = math.tanh %337 : vector<8x32xf32>
    %339 = arith.mulf %332, %338 : vector<8x32xf32>
    %340 = tpu.concatenate %78, %118, %158, %198, %238, %278, %318, %339 in 1 : vector<8x32xf32>, vector<8x32xf32>, vector<8x32xf32>, vector<8x32xf32>, vector<8x32xf32>, vector<8x32xf32>, vector<8x32xf32>, vector<8x32xf32> -> vector<8x256xf32>
    %c0_45 = arith.constant 0 : index
    %c0_46 = arith.constant 0 : index
    %341 = vector.load %arg7[%c0_45, %c0_46] : memref<256x256xf32, #tpu.memory_space<vmem>>, vector<256x256xf32>
    %cst_47 = arith.constant dense<0.000000e+00> : vector<8x256xf32>
    %342 = tpu.matmul %340, %341, %cst_47 {dimension_numbers = #tpu.dot_dimension_numbers<[1], [0], [0], [1], [0, 0, 1, 1], [], []>} : vector<8x256xf32>, vector<256x256xf32>, vector<8x256xf32> -> vector<8x256xf32>
    %343 = vector.extract_strided_slice %342 {offsets = [0, 0], sizes = [8, 64], strides = [1, 1]} : vector<8x256xf32> to vector<8x64xf32>
    %344 = vector.extract_strided_slice %342 {offsets = [0, 64], sizes = [8, 64], strides = [1, 1]} : vector<8x256xf32> to vector<8x64xf32>
    %345 = arith.maximumf %343, %344 : vector<8x64xf32>
    %346 = vector.extract_strided_slice %342 {offsets = [0, 128], sizes = [8, 64], strides = [1, 1]} : vector<8x256xf32> to vector<8x64xf32>
    %347 = vector.extract_strided_slice %342 {offsets = [0, 192], sizes = [8, 64], strides = [1, 1]} : vector<8x256xf32> to vector<8x64xf32>
    %348 = arith.maximumf %346, %347 : vector<8x64xf32>
    %349 = arith.maximumf %345, %348 : vector<8x64xf32>
    %c0_48 = arith.constant 0 : index
    %c0_49 = arith.constant 0 : index
    %350 = vector.load %arg8[%c0_48, %c0_49] : memref<64x64xf32, #tpu.memory_space<vmem>>, vector<64x64xf32>
    %cst_50 = arith.constant dense<0.000000e+00> : vector<8x64xf32>
    %351 = tpu.matmul %349, %350, %cst_50 {dimension_numbers = #tpu.dot_dimension_numbers<[1], [0], [0], [1], [0, 0, 1, 1], [], []>} : vector<8x64xf32>, vector<64x64xf32>, vector<8x64xf32> -> vector<8x64xf32>
    %c0_51 = arith.constant 0 : index
    %c0_52 = arith.constant 0 : index
    %352 = vector.load %arg9[%c0_51, %c0_52] : memref<1x64xf32, #tpu.memory_space<vmem>>, vector<1x64xf32>
    %353 = vector.broadcast %352 : vector<1x64xf32> to vector<8x64xf32>
    %354 = arith.addf %351, %353 : vector<8x64xf32>
    %cst_53 = arith.constant 0.000000e+00 : f32
    %355 = vector.broadcast %cst_53 : f32 to vector<8x64xf32>
    %356 = arith.maximumf %354, %355 : vector<8x64xf32>
    %c0_54 = arith.constant 0 : index
    %c0_55 = arith.constant 0 : index
    %357 = vector.load %arg10[%c0_54, %c0_55] : memref<64x128xf32, #tpu.memory_space<vmem>>, vector<64x128xf32>
    %cst_56 = arith.constant dense<0.000000e+00> : vector<8x128xf32>
    %358 = tpu.matmul %356, %357, %cst_56 {dimension_numbers = #tpu.dot_dimension_numbers<[1], [0], [0], [1], [0, 0, 1, 1], [], []>} : vector<8x64xf32>, vector<64x128xf32>, vector<8x128xf32> -> vector<8x128xf32>
    %c0_57 = arith.constant 0 : index
    %c0_58 = arith.constant 0 : index
    %359 = vector.load %arg11[%c0_57, %c0_58] : memref<1x128xf32, #tpu.memory_space<vmem>>, vector<1x128xf32>
    %360 = vector.broadcast %359 : vector<1x128xf32> to vector<8x128xf32>
    %361 = arith.addf %358, %360 : vector<8x128xf32>
    %c0_59 = arith.constant 0 : index
    %c0_60 = arith.constant 0 : index
    %362 = vector.load %arg12[%c0_59, %c0_60] : memref<8x128xf32, #tpu.memory_space<vmem>>, vector<8x128xf32>
    tpu.vector_store %arg12[%c0_59, %c0_60], %361 {strides = array<i32>} : memref<8x128xf32, #tpu.memory_space<vmem>>, vector<8x128xf32>,
    return
  }
}

</mosaic_0001>

<bundles_post_ra>
// kernel: base_lstm_forward.1
= control target key start
LH: loop header
LB: loop body
LE: loop exit
PB: predicated region body
PF: predicated region fallthrough
CT: control target
= control target key end

     0   :  { %17 = vsyncpa [#allocation3], 0  ;;  %s1665_s24 = smov [#allocation2]   ;;  %s1666_s26 = smov 256   ;;  %s2292_s0 = inlined_call_operand.vmem [shape: f32[64,16], index: 0, kind: input, shape index: {}]   ;;  %s2293_s1 = inlined_call_operand.vmem [shape: f32[16,128], index: 1, kind: input, shape index: {}]   ;;  %s2294_s2 = inlined_call_operand.vmem [shape: f32[1,128], index: 2, kind: input, shape index: {}]   ;;  %s2295_s3 = inlined_call_operand.vmem [shape: f32[64,256], index: 3, kind: input, shape index: {}]   ;;  %s2296_s4 = inlined_call_operand.vmem [shape: f32[1,256], index: 4, kind: input, shape index: {}]   ;;  %s2297_s5 = inlined_call_operand.vmem [shape: f32[2,8,32], index: 5, kind: input, shape index: {}]   ;;  %s2298_s6 = inlined_call_operand.vmem [shape: f32[2,8,32], index: 6, kind: input, shape index: {}]   ;;  %s2299_s7 = inlined_call_operand.hbm [shape: f32[256,256], index: 7, kind: input, shape index: {}]   ;;  %s2300_s8 = inlined_call_operand.vmem [shape: f32[64,64], index: 8, kind: input, shape index: {}]   ;;  %s2301_s9 = inlined_call_operand.vmem [shape: f32[1,64], index: 9, kind: input, shape index: {}]   ;;  %s2302_s10 = inlined_call_operand.vmem [shape: f32[64,128], index: 10, kind: input, shape index: {}]   ;;  %s2303_s11 = inlined_call_operand.vmem [shape: f32[1,128], index: 11, kind: input, shape index: {}]   ;;  %s2304_s12 = inlined_call_operand.vmem [shape: f32[8,128], index: 12, kind: output, shape index: {}]  }
   0x1   :  { %s36_s23 = sshll.u32 %s2299_s7, 4  ;;  %s38_s25 = sshll.u32 %s1665_s24, 4  ;;  %s37_s23 = int_to_ptr.hbm [resolvable:$true] %s36_s23  ;;  %s39_s25 = int_to_ptr.vmem [resolvable:$true] %s38_s25 }
   0x2   :  { %s1667_s27 = smov 16  }
   0x3   :  { %44 = dma.hbm_to_vmem [thread:$0]  %s37_s23, 8192, %s39_s25, [#allocation3], %s1666_s26, %s1666_s26, %s1667_s27  }
   0x4   :  { %1663 = dma.done.wait [#allocation3], 8192  }
   0x5   :  { %1664 = vsyncadd [#allocation3], 4294959104  ;;  %v1455_v0 = vld [vmem:[%s2297_s5 + $0x8] sm:$0xff]  ;;  %v1745_v1 = vld [vmem:[%s2295_s3 + $0x70] sm:$0xff]  ;;  %s1668_s15 = smov 32   ;;  %vm71_vm0 = vcmask 130048  }
   0x6   :  { %v1750_v2 = vld [vmem:[%s2295_s3 + $0x60] sm:$0xff]  ;;  %161 = vrot.lane.b32.xlu0 %v1455_v0, %s1668_s15  ;;  %183 = vmatpush.msra.mxu1 %v1745_v1  ;;  %v1757_v3 = vld [vmem:[%s2295_s3 + $0x50] sm:$0xff]  ;;  %v66_v4 = vld [vmem:[%s2293_s1 + $0x8] sm:$0xff]  ;;  %vm164_vm1 = vcmask 261120   ;;  %vm171_vm2 = vcmask 523264   ;;  %s1669_s17 = smov 64  }
   0x7   :  { %253 = vmatpush.msra.mxu2 %v1745_v1  ;;  %110 = vmatpush.msra.mxu0 %v66_v4  ;;  %v1767_v5 = vld [vmem:[%s2295_s3 + $0x40] sm:$0xff]  ;;  %v1774_v6 = vld [vmem:[%s2295_s3 + $0x30] sm:$0xff]  ;;  %v1853_v45 = vld [vmem:[%s2295_s3 + $0x78] sm:$0xff] }
   0x8   :  { %184 = vmatpush.msra.mxu1 %v1750_v2  ;;  %v1781_v7 = vld [vmem:[%s2295_s3 + $0x20] sm:$0xff]  ;;  %v1788_v8 = vld [vmem:[%s2295_s3 + $0x10] sm:$0xff]  ;;  %v1858_v46 = vld [vmem:[%s2295_s3 + $0x68] sm:$0xff]  ;;  %273 = vmatpush.msra.mxu3 %v1853_v45 }
   0x9   :  { %254 = vmatpush.msra.mxu2 %v1750_v2  ;;  %v65_v9 = vld [vmem:[%s2293_s1] sm:$0xff]  ;;  %v1865_v47 = vld [vmem:[%s2295_s3 + $0x58] sm:$0xff]  ;;  %v1874_v48 = vld [vmem:[%s2295_s3 + $0x48] sm:$0xff] }
   0xa   :  { %185 = vmatpush.msra.mxu1 %v1757_v3  ;;  %v1801_v10 = vld [vmem:[%s2295_s3] sm:$0xff]  ;;  %111 = vmatpush.msra.mxu0 %v65_v9  ;;  %v1883_v49 = vld [vmem:[%s2295_s3 + $0x38] sm:$0xff]  ;;  %v1892_v50 = vld [vmem:[%s2295_s3 + $0x28] sm:$0xff] }
   0xb   :  { %255 = vmatpush.msra.mxu2 %v1757_v3  ;;  %v57_v11 = vld [vmem:[%s2292_s0] sm:$0xff]  ;;  %274 = vmatpush.msra.mxu3 %v1858_v46  ;;  %v1901_v51 = vld [vmem:[%s2295_s3 + $0x18] sm:$0xff]  ;;  %v1917_v54 = vld [vmem:[%s2295_s3 + $0x8] sm:$0xff]  ;;  %s1670_s3 = smov 96  }
   0xc   :  { %186 = vmatpush.msra.mxu1 %v1767_v5  ;;  %1447 = vmatmul.msk.f32.vlgmr.msra.gmra.mxu0 %vm71_vm0, %v57_v11  ;;  %v157_v12 = vld [vmem:[%s2298_s6] sm:$0xff]  ;;  %v58_v55 = vld [vmem:[%s2292_s0 + $0x8] sm:$0xff] }
   0xd   :  { %256 = vmatpush.msra.mxu2 %v1767_v5  ;;  %217 = vrot.lane.b32.xlu1 %v157_v12, %s1668_s15  ;;  %v154_v13 = vld [vmem:[%s2297_s5] sm:$0xff]  ;;  %v1456_v56 = vld [vmem:[%s2298_s6 + $0x8] sm:$0xff] }
   0xe   :  { %187 = vmatpush.msra.mxu1 %v1774_v6  ;;  %v1832_v16 = vld [vmem:[%s2296_s4] sm:$0x3]  ;;  %912 = vmatpush.msrb.mxu0 %v1853_v45 }
   0xf   :  { %257 = vmatpush.msra.mxu2 %v1774_v6  ;;  %v1837_v17 = vld [vmem:[%s2294_s2] ss:$0 sm:$0xff]  ;;  %v1840_v19 = vperm.slane %v1832_v16, 0  ;;  %275 = vmatpush.msra.mxu3 %v1865_v47  ;;  %v1960_v60 = vperm.slane %v1832_v16, 1 }
  0x10   :  { %188 = vmatpush.msra.mxu1 %v1781_v7  ;;  %913 = vmatpush.msrb.mxu0 %v1858_v46 }
  0x11   :  { %258 = vmatpush.msra.mxu2 %v1781_v7  ;;  %276 = vmatpush.msra.mxu3 %v1874_v48 }
  0x12   :  { %189 = vmatpush.msra.mxu1 %v1788_v8  ;;  %914 = vmatpush.msrb.mxu0 %v1865_v47 }
  0x13   :  { %259 = vmatpush.msra.mxu2 %v1788_v8  ;;  %277 = vmatpush.msra.mxu3 %v1883_v49 }
  0x14   :  { %190 = vmatpush.msra.mxu1 %v1801_v10  ;;  %915 = vmatpush.msrb.mxu0 %v1874_v48 }
  0x15   :  { %260 = vmatpush.msra.mxu2 %v1801_v10  ;;  %278 = vmatpush.msra.mxu3 %v1892_v50 }
  0x16   :  { %384 = vmatpush.msrb.mxu1 %v1745_v1  ;;  %916 = vmatpush.msrb.mxu0 %v1883_v49 }
  0x17   :  { %404 = vmatpush.msrb.mxu2 %v1853_v45  ;;  %279 = vmatpush.msra.mxu3 %v1901_v51 }
  0x18   :  { %385 = vmatpush.msrb.mxu1 %v1750_v2  ;;  %917 = vmatpush.msrb.mxu0 %v1892_v50 }
  0x19   :  { %405 = vmatpush.msrb.mxu2 %v1858_v46  ;;  %280 = vmatpush.msra.mxu3 %v1917_v54 }
  0x1a   :  { %386 = vmatpush.msrb.mxu1 %v1757_v3  ;;  %918 = vmatpush.msrb.mxu0 %v1901_v51 }
  0x1b   :  { %406 = vmatpush.msrb.mxu2 %v1865_v47  ;;  %511 = vmatpush.msrb.mxu3 %v1745_v1 }
  0x1c   :  { %387 = vmatpush.msrb.mxu1 %v1767_v5  ;;  %1448 = vmatmul.msk.f32.gmra.mxu0 %vm71_vm0, %v58_v55 }
  0x1d   :  { %407 = vmatpush.msrb.mxu2 %v1874_v48  ;;  %512 = vmatpush.msrb.mxu3 %v1750_v2 }
  0x1e   :  { %388 = vmatpush.msrb.mxu1 %v1774_v6  ;;  %919 = vmatpush.msrb.mxu0 %v1917_v54 }
  0x1f   :  { %408 = vmatpush.msrb.mxu2 %v1883_v49  ;;  %513 = vmatpush.msrb.mxu3 %v1757_v3 }
  0x20   :  { %389 = vmatpush.msrb.mxu1 %v1781_v7 }
  0x21   :  { %409 = vmatpush.msrb.mxu2 %v1892_v50  ;;  %514 = vmatpush.msrb.mxu3 %v1767_v5 }
  0x22   :  { %390 = vmatpush.msrb.mxu1 %v1788_v8 }
  0x23   :  { %410 = vmatpush.msrb.mxu2 %v1901_v51  ;;  %515 = vmatpush.msrb.mxu3 %v1774_v6 }
  0x24   :  { %391 = vmatpush.msrb.mxu1 %v1801_v10 }
  0x25   :  { %411 = vmatpush.msrb.mxu2 %v1917_v54  ;;  %516 = vmatpush.msrb.mxu3 %v1781_v7 }
  0x27   :  { %517 = vmatpush.msrb.mxu3 %v1788_v8 }
  0x29   :  { %518 = vmatpush.msrb.mxu3 %v1801_v10 }
  0x78   :  { %v1824_v14 = vpop.permute.xlu0 %161 }
  0x79   :  { %v165_v15 = vsel %vm164_vm1, %v154_v13, %v1824_v14 }
  0x7a   :  { %1457 = vmatmul.msk.f32.vlgmr.msra.gmra.mxu1 %vm171_vm2, %v165_v15 }
  0x7b   :  { %531 = vmatpush.msra.mxu1 %v1853_v45 }
  0x7d   :  { %532 = vmatpush.msra.mxu1 %v1858_v46 }
  0x7f   :  { %v218_v40 = vpop.permute.xlu1 %217  ;;  %533 = vmatpush.msra.mxu1 %v1865_v47 }
  0x81   :  { %534 = vmatpush.msra.mxu1 %v1874_v48 }
  0x83   :  { %535 = vmatpush.msra.mxu1 %v1883_v49 }
  0x85   :  { %536 = vmatpush.msra.mxu1 %v1892_v50 }
  0x87   :  { %537 = vmatpush.msra.mxu1 %v1901_v51 }
  0x89   :  { %v113_v18 = vpop.f32.mrf.mxu0  ;;  %538 = vmatpush.msra.mxu1 %v1917_v54 }
  0x8a   :  { %v114_v20 = vadd.f32 %v1837_v17, %v113_v18 }
  0x99   :  { %v116_v59 = vpop.f32.mrf.mxu0 }
  0x9a   :  { %v117_v61 = vadd.f32 %v1837_v17, %v116_v59 }
  0xf7   :  { %v192_v21 = vpop.f32.mrf.mxu1 }
  0xf8   :  { %v193_v22 = vadd.f32 %v192_v21, %v1840_v19 }
  0xfa   :  { %v195_v23 = vadd.f32 %v193_v22, %v114_v20 }
  0xfc   :  { %1510 = vtanh.f32 %v195_v23  ;;  %v1458_v25 = vmul.f32 -1.442695, %v195_v23 }
  0xfe   :  { %1512 = vpow2.f32 %v1458_v25 }
 0x102   :  { %v1511_v24 = vpop.eup %1510 }
 0x103   :  { %222 = vrot.lane.b32.xlu0 %v1511_v24, %s1668_s15 }
 0x104   :  { %v1513_v26 = vpop.eup %1512 }
 0x105   :  { %v199_v27 = vadd.f32 1.0, %v1513_v26 }
 0x107   :  { %1514 = vrcp.f32 %v199_v27  ;;  %v211_v33 = vand.u32 2147483648, %v199_v27  ;;  %vm205_vm4 = vweird.f32 %v199_v27  ;;  %v209_v34 = vand.u32 2147483647, %v199_v27 }
 0x109   :  { %v212_v36 = vor.u32 1.1754944e-38, %v211_v33  ;;  %vm210_vm6 = vcmp.eq.f32.partialorder %v209_v34, 8.507059e+37 }
 0x10d   :  { %v1515_v28 = vpop.eup %1514 }
 0x10e   :  { %v201_v29 = vmul.f32 %v1515_v28, %v199_v27  ;;  %vm206_vm3 = vweird.f32 %v1515_v28 }
 0x10f   :  { %vm207_vm5 = vmor %vm205_vm4, %vm206_vm3 }
 0x110   :  { %v202_v30 = vsub.f32 1.0, %v201_v29 }
 0x112   :  { %v203_v31 = vmul.f32 %v1515_v28, %v202_v30 }
 0x114   :  { %v204_v32 = vadd.f32 %v1515_v28, %v203_v31 }
 0x116   :  { %v208_v35 = vsel %vm207_vm5, %v1515_v28, %v204_v32 }
 0x117   :  { %v213_v37 = vsel %vm210_vm6, %v212_v36, %v208_v35 }
 0x118   :  { %v220_v41 = vmul.f32 %v218_v40, %v213_v37 }
 0x175   :  { %v223_v38 = vpop.permute.xlu0 %222 }
 0x176   :  { %v225_v39 = vmul.f32 %v223_v38, %v213_v37 }
 0x178   :  { %227 = vrot.lane.b32.xlu1 %v225_v39, %s1668_s15 }
 0x1ea   :  { %v228_v42 = vpop.permute.xlu1 %227 }
 0x1eb   :  { %v1846_v43 = vadd.f32 %v228_v42, %v220_v41 }
 0x1ed   :  { %1516 = vtanh.f32 %v1846_v43 }
 0x1f3   :  { %v1517_v44 = vpop.eup %1516 }
 0x1f4   :  { %233 = vrot.lane.b32.xlu2 %v1517_v44, %s1668_s15 }
 0x24e   :  { %v234_v52 = vpop.permute.xlu2 %233 }
 0x24f   :  { %v236_v53 = vmul.f32 %v234_v52, %v213_v37 }
 0x251   :  { %238 = vrot.lane.b32.xlu2 %v236_v53, %s1669_s17 }
 0x259   :  { %344 = vrot.lane.b32.xlu2 %v1456_v56, %s1668_s15 }
 0x2ab   :  { %v239_v57 = vpop.permute.xlu2 %238 }
 0x2ac   :  { %v241_v58 = vsel %vm164_vm1, %v239_v57, %v1824_v14 }
 0x2ad   :  { %1459 = vmatmul.msk.f32.vlgmr.msra.gmra.mxu2 %vm171_vm2, %v241_v58  ;;  %1460 = vmatmul.msk.f32.vlgmr.msra.gmra.mxu3 %vm171_vm2, %v241_v58 }
 0x2ae   :  { %638 = vmatpush.msra.mxu2 %v1745_v1  ;;  %658 = vmatpush.msra.mxu3 %v1853_v45 }
 0x2b0   :  { %639 = vmatpush.msra.mxu2 %v1750_v2  ;;  %659 = vmatpush.msra.mxu3 %v1858_v46 }
 0x2b2   :  { %640 = vmatpush.msra.mxu2 %v1757_v3  ;;  %660 = vmatpush.msra.mxu3 %v1865_v47 }
 0x2b3   :  { %v345_v53 = vpop.permute.xlu2 %344 }
 0x2b4   :  { %641 = vmatpush.msra.mxu2 %v1767_v5  ;;  %661 = vmatpush.msra.mxu3 %v1874_v48 }
 0x2b6   :  { %642 = vmatpush.msra.mxu2 %v1774_v6  ;;  %662 = vmatpush.msra.mxu3 %v1883_v49 }
 0x2b8   :  { %643 = vmatpush.msra.mxu2 %v1781_v7  ;;  %663 = vmatpush.msra.mxu3 %v1892_v50 }
 0x2ba   :  { %644 = vmatpush.msra.mxu2 %v1788_v8  ;;  %664 = vmatpush.msra.mxu3 %v1901_v51 }
 0x2bc   :  { %645 = vmatpush.msra.mxu2 %v1801_v10  ;;  %665 = vmatpush.msra.mxu3 %v1917_v54 }
 0x330   :  { %v262_v62 = vpop.f32.mrf.mxu2  ;;  %v282_v63 = vpop.f32.mrf.mxu3 }
 0x331   :  { %v263_v0 = vadd.f32 %v262_v62, %v1840_v19  ;;  %v283_v4 = vadd.f32 %v282_v63, %v1960_v60 }
 0x333   :  { %v285_v9 = vadd.f32 %v263_v0, %v117_v61  ;;  %1518 = vtanh.f32 %v283_v4  ;;  %v1462_v13 = vmul.f32 -1.442695, %v283_v4 }
 0x335   :  { %1520 = vtanh.f32 %v285_v9  ;;  %v1461_v14 = vmul.f32 -1.442695, %v285_v9 }
 0x336   :  { %1522 = vpow2.f32 %v1462_v13 }
 0x337   :  { %1524 = vpow2.f32 %v1461_v14 }
 0x339   :  { %v1519_v11 = vpop.eup %1518 }
 0x33a   :  { %349 = vrot.lane.b32.xlu1 %v1519_v11, %s1668_s15 }
 0x33b   :  { %v1521_v12 = vpop.eup %1520 }
 0x33c   :  { %308 = vrot.lane.b32.xlu0 %v1521_v12, %s1668_s15  ;;  %v1523_v15 = vpop.eup %1522 }
 0x33d   :  { %v1525_v16 = vpop.eup %1524  ;;  %v326_v18 = vadd.f32 1.0, %v1523_v15 }
 0x33e   :  { %v289_v20 = vadd.f32 1.0, %v1525_v16 }
 0x33f   :  { %1526 = vrcp.f32 %v326_v18  ;;  %v338_v30 = vand.u32 2147483648, %v326_v18  ;;  %vm332_vm8 = vweird.f32 %v326_v18  ;;  %v336_v31 = vand.u32 2147483647, %v326_v18 }
 0x340   :  { %1528 = vrcp.f32 %v289_v20  ;;  %v301_v33 = vand.u32 2147483648, %v289_v20  ;;  %vm295_vm11 = vweird.f32 %v289_v20  ;;  %v299_v35 = vand.u32 2147483647, %v289_v20 }
 0x341   :  { %v339_v36 = vor.u32 1.1754944e-38, %v338_v30  ;;  %vm337_vm13 = vcmp.eq.f32.partialorder %v336_v31, 8.507059e+37 }
 0x342   :  { %v302_v40 = vor.u32 1.1754944e-38, %v301_v33  ;;  %vm300_vm14 = vcmp.eq.f32.partialorder %v299_v35, 8.507059e+37 }
 0x345   :  { %v1527_v21 = vpop.eup %1526 }
 0x346   :  { %v1529_v22 = vpop.eup %1528  ;;  %v328_v23 = vmul.f32 %v1527_v21, %v326_v18  ;;  %vm333_vm7 = vweird.f32 %v1527_v21 }
 0x347   :  { %v291_v24 = vmul.f32 %v1529_v22, %v289_v20  ;;  %vm296_vm9 = vweird.f32 %v1529_v22  ;;  %vm334_vm10 = vmor %vm332_vm8, %vm333_vm7 }
 0x348   :  { %v329_v25 = vsub.f32 1.0, %v328_v23  ;;  %vm297_vm12 = vmor %vm295_vm11, %vm296_vm9 }
 0x349   :  { %v292_v26 = vsub.f32 1.0, %v291_v24 }
 0x34a   :  { %v330_v27 = vmul.f32 %v1527_v21, %v329_v25 }
 0x34b   :  { %v293_v28 = vmul.f32 %v1529_v22, %v292_v26 }
 0x34c   :  { %v331_v29 = vadd.f32 %v1527_v21, %v330_v27 }
 0x34d   :  { %v294_v32 = vadd.f32 %v1529_v22, %v293_v28 }
 0x34e   :  { %v335_v34 = vsel %vm334_vm10, %v1527_v21, %v331_v29 }
 0x34f   :  { %v298_v37 = vsel %vm297_vm12, %v1529_v22, %v294_v32  ;;  %v340_v38 = vsel %vm337_vm13, %v339_v36, %v335_v34 }
 0x350   :  { %v303_v44 = vsel %vm300_vm14, %v302_v40, %v298_v37  ;;  %v347_v55 = vmul.f32 %v345_v53, %v340_v38 }
 0x351   :  { %v306_v58 = vmul.f32 %v303_v44, %v1846_v43  ;;  %v59_v43 = vld [vmem:[%s2292_s0 + $0x10] sm:$0xff] }
 0x352   :  { %1449 = vmatmul.msk.f32.gmra.mxu0 %vm71_vm0, %v59_v43 }
 0x3ac   :  { %v350_v39 = vpop.permute.xlu1 %349 }
 0x3ad   :  { %v352_v41 = vmul.f32 %v350_v39, %v340_v38 }
 0x3ae   :  { %v309_v42 = vpop.permute.xlu0 %308 }
 0x3af   :  { %v311_v52 = vmul.f32 %v309_v42, %v303_v44  ;;  %354 = vrot.lane.b32.xlu1 %v352_v41, %s1668_s15 }
 0x3b1   :  { %313 = vrot.lane.b32.xlu0 %v311_v52, %s1668_s15 }
 0x3cf   :  { %v119_v15 = vpop.f32.mrf.mxu0 }
 0x3d0   :  { %v120_v16 = vadd.f32 %v1837_v17, %v119_v15 }
 0x421   :  { %v355_v56 = vpop.permute.xlu1 %354 }
 0x422   :  { %v1969_v57 = vadd.f32 %v355_v56, %v347_v55 }
 0x423   :  { %v314_v59 = vpop.permute.xlu0 %313 }
 0x424   :  { %1530 = vtanh.f32 %v1969_v57  ;;  %v1973_v61 = vadd.f32 %v314_v59, %v306_v58 }
 0x426   :  { %1532 = vtanh.f32 %v1973_v61 }
 0x42a   :  { %v1531_v62 = vpop.eup %1530 }
 0x42b   :  { %360 = vrot.lane.b32.xlu0 %v1531_v62, %s1668_s15 }
 0x42c   :  { %v1533_v63 = vpop.eup %1532 }
 0x42d   :  { %319 = vrot.lane.b32.xlu2 %v1533_v63, %s1668_s15 }
 0x487   :  { %v320_v0 = vpop.permute.xlu2 %319 }
 0x488   :  { %v322_v4 = vmul.f32 %v320_v0, %v303_v44 }
 0x48a   :  { %365 = vrot.lane.b32.xlu1 %v322_v4, %s1669_s17 }
 0x49d   :  { %v361_v9 = vpop.permute.xlu0 %360 }
 0x49e   :  { %v1979_v11 = vmul.f32 %v361_v9, %v340_v38 }
 0x4a0   :  { %369 = vrot.lane.b32.xlu2 %v1979_v11, %s1670_s3 }
 0x4fa   :  { %v370_v12 = vpop.permute.xlu2 %369 }
 0x4fc   :  { %v366_v13 = vpop.permute.xlu1 %365 }
 0x4fd   :  { %v372_v14 = vsel %vm164_vm1, %v366_v13, %v370_v12 }
 0x4fe   :  { %1463 = vmatmul.msk.f32.vlgmr.msrb.gmra.mxu1 %vm171_vm2, %v372_v14  ;;  %1464 = vmatmul.msk.f32.vlgmr.msrb.gmra.mxu2 %vm171_vm2, %v372_v14 }
 0x4ff   :  { %765 = vmatpush.msrb.mxu1 %v1745_v1  ;;  %785 = vmatpush.msrb.mxu2 %v1853_v45 }
 0x501   :  { %766 = vmatpush.msrb.mxu1 %v1750_v2  ;;  %786 = vmatpush.msrb.mxu2 %v1858_v46 }
 0x503   :  { %767 = vmatpush.msrb.mxu1 %v1757_v3  ;;  %787 = vmatpush.msrb.mxu2 %v1865_v47 }
 0x505   :  { %768 = vmatpush.msrb.mxu1 %v1767_v5  ;;  %788 = vmatpush.msrb.mxu2 %v1874_v48 }
 0x507   :  { %769 = vmatpush.msrb.mxu1 %v1774_v6  ;;  %789 = vmatpush.msrb.mxu2 %v1883_v49 }
 0x509   :  { %770 = vmatpush.msrb.mxu1 %v1781_v7  ;;  %790 = vmatpush.msrb.mxu2 %v1892_v50 }
 0x50b   :  { %771 = vmatpush.msrb.mxu1 %v1788_v8  ;;  %791 = vmatpush.msrb.mxu2 %v1901_v51 }
 0x50d   :  { %772 = vmatpush.msrb.mxu1 %v1801_v10  ;;  %792 = vmatpush.msrb.mxu2 %v1917_v54 }
 0x57b   :  { %v393_v18 = vpop.f32.mrf.mxu1 }
 0x57c   :  { %v394_v20 = vadd.f32 %v393_v18, %v1840_v19 }
 0x57e   :  { %v416_v21 = vadd.f32 %v394_v20, %v120_v16 }
 0x580   :  { %1534 = vtanh.f32 %v416_v21  ;;  %v1465_v26 = vmul.f32 -1.442695, %v416_v21 }
 0x581   :  { %v413_v22 = vpop.f32.mrf.mxu2 }
 0x582   :  { %v414_v23 = vadd.f32 %v413_v22, %v1960_v60 }
 0x584   :  { %1536 = vtanh.f32 %v414_v23  ;;  %v1466_v27 = vmul.f32 -1.442695, %v414_v23 }
 0x585   :  { %1538 = vpow2.f32 %v1465_v26 }
 0x586   :  { %v1535_v24 = vpop.eup %1534  ;;  %1540 = vpow2.f32 %v1466_v27 }
 0x587   :  { %439 = vrot.lane.b32.xlu0 %v1535_v24, %s1668_s15 }
 0x58a   :  { %v1537_v25 = vpop.eup %1536 }
 0x58b   :  { %476 = vrot.lane.b32.xlu1 %v1537_v25, %s1668_s15  ;;  %v1539_v28 = vpop.eup %1538 }
 0x58c   :  { %v420_v29 = vadd.f32 1.0, %v1539_v28  ;;  %v1541_v30 = vpop.eup %1540 }
 0x58d   :  { %v457_v31 = vadd.f32 1.0, %v1541_v30 }
 0x58e   :  { %1542 = vrcp.f32 %v420_v29  ;;  %v432_v41 = vand.u32 2147483648, %v420_v29  ;;  %vm426_vm3 = vweird.f32 %v420_v29  ;;  %v430_v42 = vand.u32 2147483647, %v420_v29 }
 0x58f   :  { %1544 = vrcp.f32 %v457_v31  ;;  %v469_v55 = vand.u32 2147483648, %v457_v31  ;;  %vm463_vm7 = vweird.f32 %v457_v31  ;;  %v467_v56 = vand.u32 2147483647, %v457_v31 }
 0x590   :  { %v433_v53 = vor.u32 1.1754944e-38, %v432_v41  ;;  %vm431_vm6 = vcmp.eq.f32.partialorder %v430_v42, 8.507059e+37 }
 0x591   :  { %v470_v0 = vor.u32 1.1754944e-38, %v469_v55  ;;  %vm468_vm9 = vcmp.eq.f32.partialorder %v467_v56, 8.507059e+37 }
 0x594   :  { %v1543_v32 = vpop.eup %1542 }
 0x595   :  { %v422_v33 = vmul.f32 %v1543_v32, %v420_v29  ;;  %v1545_v34 = vpop.eup %1544  ;;  %vm427_vm15 = vweird.f32 %v1543_v32 }
 0x596   :  { %v459_v36 = vmul.f32 %v1545_v34, %v457_v31  ;;  %vm428_vm4 = vmor %vm426_vm3, %vm427_vm15  ;;  %vm464_vm5 = vweird.f32 %v1545_v34 }
 0x597   :  { %v423_v35 = vsub.f32 1.0, %v422_v33  ;;  %vm465_vm8 = vmor %vm463_vm7, %vm464_vm5 }
 0x598   :  { %v460_v38 = vsub.f32 1.0, %v459_v36 }
 0x599   :  { %v424_v37 = vmul.f32 %v1543_v32, %v423_v35 }
 0x59a   :  { %v461_v40 = vmul.f32 %v1545_v34, %v460_v38 }
 0x59b   :  { %v425_v39 = vadd.f32 %v1543_v32, %v424_v37 }
 0x59c   :  { %v462_v52 = vadd.f32 %v1545_v34, %v461_v40 }
 0x59d   :  { %v429_v44 = vsel %vm428_vm4, %v1543_v32, %v425_v39 }
 0x59e   :  { %v434_v59 = vsel %vm431_vm6, %v433_v53, %v429_v44  ;;  %v466_v63 = vsel %vm465_vm8, %v1545_v34, %v462_v52 }
 0x59f   :  { %v471_v9 = vsel %vm468_vm9, %v470_v0, %v466_v63  ;;  %v437_v12 = vmul.f32 %v434_v59, %v1973_v61 }
 0x5a0   :  { %v474_v16 = vmul.f32 %v471_v9, %v1969_v57  ;;  %v60_v57 = vld [vmem:[%s2292_s0 + $0x18] sm:$0xff] }
 0x5a1   :  { %1450 = vmatmul.msk.f32.gmra.mxu0 %vm71_vm0, %v60_v57 }
 0x5f9   :  { %v440_v58 = vpop.permute.xlu0 %439 }
 0x5fa   :  { %v442_v62 = vmul.f32 %v440_v58, %v434_v59 }
 0x5fc   :  { %444 = vrot.lane.b32.xlu2 %v442_v62, %s1668_s15 }
 0x5fd   :  { %v477_v4 = vpop.permute.xlu1 %476 }
 0x5fe   :  { %v479_v43 = vmul.f32 %v477_v4, %v471_v9 }
 0x600   :  { %481 = vrot.lane.b32.xlu0 %v479_v43, %s1668_s15 }
 0x656   :  { %v445_v13 = vpop.permute.xlu2 %444 }
 0x657   :  { %v2014_v14 = vadd.f32 %v445_v13, %v437_v12 }
 0x659   :  { %1546 = vtanh.f32 %v2014_v14 }
 0x65f   :  { %v1547_v15 = vpop.eup %1546 }
 0x660   :  { %450 = vrot.lane.b32.xlu1 %v1547_v15, %s1668_s15 }
 0x672   :  { %v482_v18 = vpop.permute.xlu0 %481 }
 0x673   :  { %v2019_v20 = vadd.f32 %v482_v18, %v474_v16 }
 0x675   :  { %1548 = vtanh.f32 %v2019_v20 }
 0x67b   :  { %v1549_v21 = vpop.eup %1548 }
 0x67c   :  { %487 = vrot.lane.b32.xlu2 %v1549_v21, %s1668_s15 }
 0x6d2   :  { %v451_v22 = vpop.permute.xlu1 %450 }
 0x6d3   :  { %v453_v61 = vmul.f32 %v451_v22, %v434_v59 }
 0x6d5   :  { %492 = vrot.lane.b32.xlu0 %v453_v61, %s1669_s17 }
 0x6d6   :  { %v488_v23 = vpop.permute.xlu2 %487 }
 0x6d7   :  { %v490_v24 = vmul.f32 %v488_v23, %v471_v9 }
 0x6d9   :  { %496 = vrot.lane.b32.xlu1 %v490_v24, %s1670_s3 }
 0x747   :  { %v493_v25 = vpop.permute.xlu0 %492 }
 0x74b   :  { %v2029_v26 = vpop.permute.xlu1 %496 }
 0x74c   :  { %v499_v27 = vsel %vm164_vm1, %v493_v25, %v2029_v26 }
 0x74d   :  { %1467 = vmatmul.msk.f32.vlgmr.msrb.gmra.mxu3 %vm171_vm2, %v499_v27  ;;  %1468 = vmatmul.msk.f32.vlgmr.msra.gmra.mxu1 %vm171_vm2, %v499_v27 }
 0x74e   :  { %892 = vmatpush.msrb.mxu3 %v1745_v1  ;;  %1019 = vmatpush.msra.mxu1 %v1745_v1 }
 0x750   :  { %893 = vmatpush.msrb.mxu3 %v1750_v2  ;;  %1020 = vmatpush.msra.mxu1 %v1750_v2 }
 0x752   :  { %894 = vmatpush.msrb.mxu3 %v1757_v3  ;;  %1021 = vmatpush.msra.mxu1 %v1757_v3  ;;  %v122_v3 = vpop.f32.mrf.mxu0 }
 0x754   :  { %895 = vmatpush.msrb.mxu3 %v1767_v5  ;;  %1022 = vmatpush.msra.mxu1 %v1767_v5  ;;  %v123_v5 = vadd.f32 %v1837_v17, %v122_v3 }
 0x756   :  { %896 = vmatpush.msrb.mxu3 %v1774_v6  ;;  %1023 = vmatpush.msra.mxu1 %v1774_v6 }
 0x758   :  { %897 = vmatpush.msrb.mxu3 %v1781_v7  ;;  %1024 = vmatpush.msra.mxu1 %v1781_v7 }
 0x75a   :  { %898 = vmatpush.msrb.mxu3 %v1788_v8  ;;  %1025 = vmatpush.msra.mxu1 %v1788_v8 }
 0x75c   :  { %899 = vmatpush.msrb.mxu3 %v1801_v10  ;;  %1026 = vmatpush.msra.mxu1 %v1801_v10 }
 0x7ca   :  { %v540_v1 = vpop.f32.mrf.mxu1 }
 0x7cb   :  { %v541_v2 = vadd.f32 %v540_v1, %v1960_v60 }
 0x7cd   :  { %1550 = vtanh.f32 %v541_v2  ;;  %v1470_v32 = vmul.f32 -1.442695, %v541_v2 }
 0x7d0   :  { %v520_v6 = vpop.f32.mrf.mxu3 }
 0x7d1   :  { %v521_v28 = vadd.f32 %v520_v6, %v1840_v19 }
 0x7d3   :  { %v1551_v29 = vpop.eup %1550  ;;  %v543_v7 = vadd.f32 %v521_v28, %v123_v5 }
 0x7d4   :  { %603 = vrot.lane.b32.xlu0 %v1551_v29, %s1668_s15 }
 0x7d5   :  { %1552 = vtanh.f32 %v543_v7  ;;  %v1469_v30 = vmul.f32 -1.442695, %v543_v7 }
 0x7d7   :  { %1554 = vpow2.f32 %v1469_v30 }
 0x7db   :  { %v1553_v8 = vpop.eup %1552 }
 0x7dc   :  { %566 = vrot.lane.b32.xlu2 %v1553_v8, %s1668_s15 }
 0x7dd   :  { %v1555_v10 = vpop.eup %1554 }
 0x7de   :  { %v547_v31 = vadd.f32 1.0, %v1555_v10 }
 0x7e0   :  { %1556 = vrcp.f32 %v547_v31  ;;  %v559_v41 = vand.u32 2147483648, %v547_v31  ;;  %vm553_vm11 = vweird.f32 %v547_v31  ;;  %v557_v42 = vand.u32 2147483647, %v547_v31 }
 0x7e1   :  { %1558 = vpow2.f32 %v1470_v32 }
 0x7e2   :  { %v560_v53 = vor.u32 1.1754944e-38, %v559_v41  ;;  %vm558_vm13 = vcmp.eq.f32.partialorder %v557_v42, 8.507059e+37 }
 0x7e6   :  { %v1557_v33 = vpop.eup %1556 }
 0x7e7   :  { %v1559_v34 = vpop.eup %1558  ;;  %v549_v35 = vmul.f32 %v1557_v33, %v547_v31  ;;  %vm554_vm10 = vweird.f32 %v1557_v33 }
 0x7e8   :  { %v584_v36 = vadd.f32 1.0, %v1559_v34  ;;  %vm555_vm12 = vmor %vm553_vm11, %vm554_vm10 }
 0x7e9   :  { %v550_v37 = vsub.f32 1.0, %v549_v35 }
 0x7ea   :  { %1560 = vrcp.f32 %v584_v36  ;;  %v596_v0 = vand.u32 2147483648, %v584_v36  ;;  %vm590_vm15 = vweird.f32 %v584_v36  ;;  %v594_v4 = vand.u32 2147483647, %v584_v36 }
 0x7eb   :  { %v551_v38 = vmul.f32 %v1557_v33, %v550_v37 }
 0x7ec   :  { %v597_v43 = vor.u32 1.1754944e-38, %v596_v0  ;;  %vm595_vm4 = vcmp.eq.f32.partialorder %v594_v4, 8.507059e+37 }
 0x7ed   :  { %v552_v39 = vadd.f32 %v1557_v33, %v551_v38 }
 0x7ef   :  { %v556_v44 = vsel %vm555_vm12, %v1557_v33, %v552_v39 }
 0x7f0   :  { %v1561_v40 = vpop.eup %1560  ;;  %v561_v56 = vsel %vm558_vm13, %v560_v53, %v556_v44 }
 0x7f1   :  { %v586_v52 = vmul.f32 %v1561_v40, %v584_v36  ;;  %vm591_vm14 = vweird.f32 %v1561_v40  ;;  %v564_v22 = vmul.f32 %v561_v56, %v2014_v14  ;;  %v61_v14 = vld [vmem:[%s2292_s0 + $0x20] sm:$0xff] }
 0x7f2   :  { %vm592_vm3 = vmor %vm590_vm15, %vm591_vm14  ;;  %1451 = vmatmul.msk.f32.gmra.mxu0 %vm71_vm0, %v61_v14 }
 0x7f3   :  { %v587_v59 = vsub.f32 1.0, %v586_v52 }
 0x7f5   :  { %v588_v62 = vmul.f32 %v1561_v40, %v587_v59 }
 0x7f7   :  { %v589_v63 = vadd.f32 %v1561_v40, %v588_v62 }
 0x7f9   :  { %v593_v9 = vsel %vm592_vm3, %v1561_v40, %v589_v63 }
 0x7fa   :  { %v598_v13 = vsel %vm595_vm4, %v597_v43, %v593_v9 }
 0x7fb   :  { %v601_v16 = vmul.f32 %v598_v13, %v2019_v20 }
 0x836   :  { %v567_v55 = vpop.permute.xlu2 %566 }
 0x837   :  { %v569_v58 = vmul.f32 %v567_v55, %v561_v56 }
 0x839   :  { %571 = vrot.lane.b32.xlu1 %v569_v58, %s1668_s15 }
 0x846   :  { %v604_v12 = vpop.permute.xlu0 %603 }
 0x847   :  { %v606_v15 = vmul.f32 %v604_v12, %v598_v13 }
 0x849   :  { %608 = vrot.lane.b32.xlu2 %v606_v15, %s1668_s15 }
 0x8a3   :  { %v609_v18 = vpop.permute.xlu2 %608 }
 0x8a4   :  { %v2059_v21 = vadd.f32 %v609_v18, %v601_v16 }
 0x8a6   :  { %1562 = vtanh.f32 %v2059_v21 }
 0x8ab   :  { %v572_v61 = vpop.permute.xlu1 %571 }
 0x8ac   :  { %v1563_v23 = vpop.eup %1562  ;;  %v2063_v24 = vadd.f32 %v572_v61, %v564_v22 }
 0x8ad   :  { %614 = vrot.lane.b32.xlu1 %v1563_v23, %s1668_s15 }
 0x8ae   :  { %1564 = vtanh.f32 %v2063_v24 }
 0x8b4   :  { %v1565_v57 = vpop.eup %1564 }
 0x8b5   :  { %577 = vrot.lane.b32.xlu0 %v1565_v57, %s1668_s15 }
 0x91f   :  { %v615_v25 = vpop.permute.xlu1 %614 }
 0x920   :  { %v2068_v20 = vmul.f32 %v615_v25, %v598_v13 }
 0x922   :  { %623 = vrot.lane.b32.xlu0 %v2068_v20, %s1670_s3 }
 0x927   :  { %v578_v27 = vpop.permute.xlu0 %577 }
 0x928   :  { %v580_v1 = vmul.f32 %v578_v27, %v561_v56 }
 0x92a   :  { %619 = vrot.lane.b32.xlu2 %v580_v1, %s1669_s17 }
 0x984   :  { %v620_v2 = vpop.permute.xlu2 %619 }
 0x994   :  { %v624_v3 = vpop.permute.xlu0 %623 }
 0x995   :  { %v626_v5 = vsel %vm164_vm1, %v620_v2, %v624_v3 }
 0x996   :  { %1471 = vmatmul.msk.f32.vlgmr.msra.gmra.mxu2 %vm171_vm2, %v626_v5  ;;  %1472 = vmatmul.msk.f32.vlgmr.msra.gmra.mxu3 %vm171_vm2, %v626_v5 }
 0x997   :  { %1039 = vmatpush.msra.mxu2 %v1853_v45  ;;  %1146 = vmatpush.msra.mxu3 %v1853_v45  ;;  %v125_v45 = vpop.f32.mrf.mxu0 }
 0x999   :  { %1040 = vmatpush.msra.mxu2 %v1858_v46  ;;  %1147 = vmatpush.msra.mxu3 %v1858_v46  ;;  %v126_v46 = vadd.f32 %v1837_v17, %v125_v45 }
 0x99b   :  { %1041 = vmatpush.msra.mxu2 %v1865_v47  ;;  %1148 = vmatpush.msra.mxu3 %v1865_v47 }
 0x99d   :  { %1042 = vmatpush.msra.mxu2 %v1874_v48  ;;  %1149 = vmatpush.msra.mxu3 %v1874_v48 }
 0x99f   :  { %1043 = vmatpush.msra.mxu2 %v1883_v49  ;;  %1150 = vmatpush.msra.mxu3 %v1883_v49 }
 0x9a1   :  { %1044 = vmatpush.msra.mxu2 %v1892_v50  ;;  %1151 = vmatpush.msra.mxu3 %v1892_v50 }
 0x9a3   :  { %1045 = vmatpush.msra.mxu2 %v1901_v51  ;;  %1152 = vmatpush.msra.mxu3 %v1901_v51 }
 0x9a5   :  { %1046 = vmatpush.msra.mxu2 %v1917_v54  ;;  %1153 = vmatpush.msra.mxu3 %v1917_v54 }
 0xa19   :  { %v647_v47 = vpop.f32.mrf.mxu2  ;;  %v667_v48 = vpop.f32.mrf.mxu3 }
 0xa1a   :  { %v648_v6 = vadd.f32 %v647_v47, %v1840_v19  ;;  %v668_v49 = vadd.f32 %v667_v48, %v1960_v60 }
 0xa1c   :  { %v670_v28 = vadd.f32 %v648_v6, %v126_v46  ;;  %1566 = vtanh.f32 %v668_v49  ;;  %v1474_v29 = vmul.f32 -1.442695, %v668_v49 }
 0xa1e   :  { %1568 = vtanh.f32 %v670_v28  ;;  %v1473_v30 = vmul.f32 -1.442695, %v670_v28 }
 0xa1f   :  { %1570 = vpow2.f32 %v1474_v29 }
 0xa22   :  { %v1567_v50 = vpop.eup %1566 }
 0xa23   :  { %730 = vrot.lane.b32.xlu2 %v1567_v50, %s1668_s15 }
 0xa24   :  { %v1569_v51 = vpop.eup %1568 }
 0xa25   :  { %693 = vrot.lane.b32.xlu1 %v1569_v51, %s1668_s15  ;;  %v1571_v54 = vpop.eup %1570 }
 0xa26   :  { %v711_v7 = vadd.f32 1.0, %v1571_v54 }
 0xa28   :  { %1572 = vrcp.f32 %v711_v7  ;;  %v723_v36 = vand.u32 2147483648, %v711_v7  ;;  %vm717_vm6 = vweird.f32 %v711_v7  ;;  %v721_v37 = vand.u32 2147483647, %v711_v7 }
 0xa29   :  { %1574 = vpow2.f32 %v1473_v30 }
 0xa2a   :  { %v724_v39 = vor.u32 1.1754944e-38, %v723_v36  ;;  %vm722_vm8 = vcmp.eq.f32.partialorder %v721_v37, 8.507059e+37 }
 0xa2e   :  { %v1573_v8 = vpop.eup %1572 }
 0xa2f   :  { %v713_v10 = vmul.f32 %v1573_v8, %v711_v7  ;;  %v1575_v33 = vpop.eup %1574  ;;  %vm718_vm5 = vweird.f32 %v1573_v8 }
 0xa30   :  { %v674_v35 = vadd.f32 1.0, %v1575_v33  ;;  %vm719_vm7 = vmor %vm717_vm6, %vm718_vm5 }
 0xa31   :  { %v714_v31 = vsub.f32 1.0, %v713_v10 }
 0xa32   :  { %1576 = vrcp.f32 %v674_v35  ;;  %v686_v58 = vand.u32 2147483648, %v674_v35  ;;  %vm680_vm10 = vweird.f32 %v674_v35  ;;  %v684_v59 = vand.u32 2147483647, %v674_v35 }
 0xa33   :  { %v715_v32 = vmul.f32 %v1573_v8, %v714_v31 }
 0xa34   :  { %v687_v63 = vor.u32 1.1754944e-38, %v686_v58  ;;  %vm685_vm12 = vcmp.eq.f32.partialorder %v684_v59, 8.507059e+37 }
 0xa35   :  { %v716_v34 = vadd.f32 %v1573_v8, %v715_v32 }
 0xa37   :  { %v720_v38 = vsel %vm719_vm7, %v1573_v8, %v716_v34 }
 0xa38   :  { %v725_v41 = vsel %vm722_vm8, %v724_v39, %v720_v38  ;;  %v1577_v44 = vpop.eup %1576 }
 0xa39   :  { %v676_v52 = vmul.f32 %v1577_v44, %v674_v35  ;;  %vm681_vm9 = vweird.f32 %v1577_v44  ;;  %v728_v43 = vmul.f32 %v725_v41, %v2059_v21 }
 0xa3a   :  { %vm682_vm11 = vmor %vm680_vm10, %vm681_vm9 }
 0xa3b   :  { %v677_v53 = vsub.f32 1.0, %v676_v52 }
 0xa3d   :  { %v678_v55 = vmul.f32 %v1577_v44, %v677_v53 }
 0xa3f   :  { %v679_v56 = vadd.f32 %v1577_v44, %v678_v55 }
 0xa41   :  { %v683_v62 = vsel %vm682_vm11, %v1577_v44, %v679_v56 }
 0xa42   :  { %v688_v4 = vsel %vm685_vm12, %v687_v63, %v683_v62 }
 0xa43   :  { %v691_v16 = vmul.f32 %v688_v4, %v2063_v24  ;;  %v62_v24 = vld [vmem:[%s2292_s0 + $0x28] sm:$0xff] }
 0xa44   :  { %1452 = vmatmul.msk.f32.gmra.mxu0 %vm71_vm0, %v62_v24 }
 0xa7d   :  { %v731_v40 = vpop.permute.xlu2 %730 }
 0xa7e   :  { %v733_v42 = vmul.f32 %v731_v40, %v725_v41 }
 0xa80   :  { %735 = vrot.lane.b32.xlu1 %v733_v42, %s1668_s15 }
 0xa97   :  { %v694_v0 = vpop.permute.xlu1 %693 }
 0xa98   :  { %v696_v9 = vmul.f32 %v694_v0, %v688_v4 }
 0xa9a   :  { %698 = vrot.lane.b32.xlu0 %v696_v9, %s1668_s15 }
 0xac1   :  { %v128_v2 = vpop.f32.mrf.mxu0 }
 0xac2   :  { %v129_v3 = vadd.f32 %v1837_v17, %v128_v2 }
 0xaf2   :  { %v736_v12 = vpop.permute.xlu1 %735 }
 0xaf3   :  { %v2104_v13 = vadd.f32 %v736_v12, %v728_v43 }
 0xaf5   :  { %1578 = vtanh.f32 %v2104_v13 }
 0xafb   :  { %v1579_v15 = vpop.eup %1578 }
 0xafc   :  { %741 = vrot.lane.b32.xlu0 %v1579_v15, %s1668_s15 }
 0xb0c   :  { %v699_v18 = vpop.permute.xlu0 %698 }
 0xb0d   :  { %v2109_v22 = vadd.f32 %v699_v18, %v691_v16  ;;  %v63_v18 = vld [vmem:[%s2292_s0 + $0x30] sm:$0xff] }
 0xb0e   :  { %1453 = vmatmul.msk.f32.gmra.mxu0 %vm71_vm0, %v63_v18 }
 0xb0f   :  { %1580 = vtanh.f32 %v2109_v22 }
 0xb15   :  { %v1581_v61 = vpop.eup %1580 }
 0xb16   :  { %704 = vrot.lane.b32.xlu2 %v1581_v61, %s1668_s15 }
 0xb6e   :  { %v742_v23 = vpop.permute.xlu0 %741 }
 0xb6f   :  { %v2113_v21 = vmul.f32 %v742_v23, %v725_v41 }
 0xb70   :  { %v705_v57 = vpop.permute.xlu2 %704 }
 0xb71   :  { %v707_v25 = vmul.f32 %v705_v57, %v688_v4  ;;  %750 = vrot.lane.b32.xlu2 %v2113_v21, %s1670_s3 }
 0xb73   :  { %746 = vrot.lane.b32.xlu1 %v707_v25, %s1669_s17 }
 0xbcb   :  { %v751_v27 = vpop.permute.xlu2 %750 }
 0xbe5   :  { %v747_v1 = vpop.permute.xlu1 %746 }
 0xbe6   :  { %v753_v14 = vsel %vm164_vm1, %v747_v1, %v751_v27  ;;  %v131_v1 = vpop.f32.mrf.mxu0 }
 0xbe7   :  { %1475 = vmatmul.msk.f32.vlgmr.msrb.gmra.mxu1 %vm171_vm2, %v753_v14  ;;  %1476 = vmatmul.msk.f32.vlgmr.msrb.gmra.mxu2 %vm171_vm2, %v753_v14 }
 0xc64   :  { %v774_v5 = vpop.f32.mrf.mxu1 }
 0xc65   :  { %v775_v45 = vadd.f32 %v774_v5, %v1840_v19 }
 0xc67   :  { %v797_v46 = vadd.f32 %v775_v45, %v129_v3  ;;  %v2164_v45 = vld [vmem:[%s2294_s2] ss:$0 sm:$0xff] }
 0xc69   :  { %1582 = vtanh.f32 %v797_v46  ;;  %v1477_v28 = vmul.f32 -1.442695, %v797_v46  ;;  %v132_v46 = vadd.f32 %v2164_v45, %v131_v1 }
 0xc6a   :  { %v794_v47 = vpop.f32.mrf.mxu2 }
 0xc6b   :  { %v795_v48 = vadd.f32 %v794_v47, %v1960_v60 }
 0xc6d   :  { %1584 = vtanh.f32 %v795_v48  ;;  %v1478_v50 = vmul.f32 -1.442695, %v795_v48 }
 0xc6e   :  { %1586 = vpow2.f32 %v1477_v28 }
 0xc6f   :  { %v1583_v6 = vpop.eup %1582  ;;  %1588 = vpow2.f32 %v1478_v50 }
 0xc70   :  { %820 = vrot.lane.b32.xlu0 %v1583_v6, %s1668_s15 }
 0xc73   :  { %v1585_v49 = vpop.eup %1584 }
 0xc74   :  { %857 = vrot.lane.b32.xlu1 %v1585_v49, %s1668_s15  ;;  %v1587_v17 = vpop.eup %1586 }
 0xc75   :  { %v801_v51 = vadd.f32 1.0, %v1587_v17  ;;  %v1589_v29 = vpop.eup %1588 }
 0xc76   :  { %v838_v54 = vadd.f32 1.0, %v1589_v29 }
 0xc77   :  { %1590 = vrcp.f32 %v801_v51  ;;  %v813_v36 = vand.u32 2147483648, %v801_v51  ;;  %vm807_vm14 = vweird.f32 %v801_v51  ;;  %v811_v37 = vand.u32 2147483647, %v801_v51 }
 0xc78   :  { %1592 = vrcp.f32 %v838_v54  ;;  %v850_v41 = vand.u32 2147483648, %v838_v54  ;;  %vm844_vm5 = vweird.f32 %v838_v54  ;;  %v848_v42 = vand.u32 2147483647, %v838_v54 }
 0xc79   :  { %v814_v40 = vor.u32 1.1754944e-38, %v813_v36  ;;  %vm812_vm4 = vcmp.eq.f32.partialorder %v811_v37, 8.507059e+37 }
 0xc7a   :  { %v851_v56 = vor.u32 1.1754944e-38, %v850_v41  ;;  %vm849_vm7 = vcmp.eq.f32.partialorder %v848_v42, 8.507059e+37 }
 0xc7d   :  { %v1591_v7 = vpop.eup %1590 }
 0xc7e   :  { %v803_v8 = vmul.f32 %v1591_v7, %v801_v51  ;;  %v1593_v30 = vpop.eup %1592  ;;  %vm808_vm13 = vweird.f32 %v1591_v7 }
 0xc7f   :  { %v840_v31 = vmul.f32 %v1593_v30, %v838_v54  ;;  %vm809_vm15 = vmor %vm807_vm14, %vm808_vm13  ;;  %vm845_vm3 = vweird.f32 %v1593_v30 }
 0xc80   :  { %v804_v10 = vsub.f32 1.0, %v803_v8  ;;  %vm846_vm6 = vmor %vm844_vm5, %vm845_vm3 }
 0xc81   :  { %v841_v33 = vsub.f32 1.0, %v840_v31 }
 0xc82   :  { %v805_v32 = vmul.f32 %v1591_v7, %v804_v10 }
 0xc83   :  { %v842_v35 = vmul.f32 %v1593_v30, %v841_v33 }
 0xc84   :  { %v806_v34 = vadd.f32 %v1591_v7, %v805_v32 }
 0xc85   :  { %v843_v39 = vadd.f32 %v1593_v30, %v842_v35 }
 0xc86   :  { %v810_v38 = vsel %vm809_vm15, %v1591_v7, %v806_v34 }
 0xc87   :  { %v815_v52 = vsel %vm812_vm4, %v814_v40, %v810_v38  ;;  %v847_v55 = vsel %vm846_vm6, %v1593_v30, %v843_v39 }
 0xc88   :  { %v852_v59 = vsel %vm849_vm7, %v851_v56, %v847_v55  ;;  %v818_v63 = vmul.f32 %v815_v52, %v2109_v22  ;;  %v64_v22 = vld [vmem:[%s2292_s0 + $0x38] sm:$0xff] }
 0xc89   :  { %v855_v43 = vmul.f32 %v852_v59, %v2104_v13  ;;  %1454 = vmatmul.msk.f32.gmra.mxu0 %vm71_vm0, %v64_v22 }
 0xce2   :  { %v821_v44 = vpop.permute.xlu0 %820 }
 0xce3   :  { %v823_v53 = vmul.f32 %v821_v44, %v815_v52 }
 0xce5   :  { %825 = vrot.lane.b32.xlu2 %v823_v53, %s1668_s15 }
 0xce6   :  { %v858_v58 = vpop.permute.xlu1 %857 }
 0xce7   :  { %v860_v62 = vmul.f32 %v858_v58, %v852_v59 }
 0xce9   :  { %862 = vrot.lane.b32.xlu0 %v860_v62, %s1668_s15 }
 0xd06   :  { %v2158_v14 = vpop.f32.mrf.mxu0 }
 0xd07   :  { %v135_v1 = vadd.f32 %v2164_v45, %v2158_v14 }
 0xd3f   :  { %v826_v0 = vpop.permute.xlu2 %825 }
 0xd40   :  { %v2133_v4 = vadd.f32 %v826_v0, %v818_v63 }
 0xd42   :  { %1594 = vtanh.f32 %v2133_v4 }
 0xd48   :  { %v1595_v9 = vpop.eup %1594 }
 0xd49   :  { %831 = vrot.lane.b32.xlu1 %v1595_v9, %s1668_s15 }
 0xd5b   :  { %v863_v12 = vpop.permute.xlu0 %862 }
 0xd5c   :  { %v2138_v15 = vadd.f32 %v863_v12, %v855_v43 }
 0xd5e   :  { %1596 = vtanh.f32 %v2138_v15 }
 0xd64   :  { %v1597_v16 = vpop.eup %1596 }
 0xd65   :  { %868 = vrot.lane.b32.xlu2 %v1597_v16, %s1668_s15 }
 0xdbb   :  { %v832_v13 = vpop.permute.xlu1 %831 }
 0xdbc   :  { %v834_v61 = vmul.f32 %v832_v13, %v815_v52 }
 0xdbe   :  { %873 = vrot.lane.b32.xlu0 %v834_v61, %s1669_s17 }
 0xdbf   :  { %v869_v23 = vpop.permute.xlu2 %868 }
 0xdc0   :  { %v2151_v57 = vmul.f32 %v869_v23, %v852_v59 }
 0xdc2   :  { %877 = vrot.lane.b32.xlu1 %v2151_v57, %s1670_s3 }
 0xe30   :  { %v874_v25 = vpop.permute.xlu0 %873 }
 0xe34   :  { %v878_v24 = vpop.permute.xlu1 %877 }
 0xe35   :  { %v880_v27 = vsel %vm164_vm1, %v874_v25, %v878_v24 }
 0xe36   :  { %1479 = vmatmul.msk.f32.vlgmr.msrb.gmra.mxu3 %vm171_vm2, %v880_v27  ;;  %1480 = vmatmul.msk.f32.vlgmr.msrb.gmra.mxu0 %vm171_vm2, %v880_v27 }
 0xeb3   :  { %v921_v2 = vpop.f32.mrf.mxu0 }
 0xeb4   :  { %v922_v3 = vadd.f32 %v921_v2, %v1960_v60 }
 0xeb6   :  { %1598 = vtanh.f32 %v922_v3  ;;  %v1482_v51 = vmul.f32 -1.442695, %v922_v3 }
 0xeb9   :  { %v901_v5 = vpop.f32.mrf.mxu3 }
 0xeba   :  { %v902_v47 = vadd.f32 %v901_v5, %v1840_v19 }
 0xebc   :  { %v1599_v48 = vpop.eup %1598  ;;  %v924_v6 = vadd.f32 %v902_v47, %v132_v46 }
 0xebd   :  { %984 = vrot.lane.b32.xlu0 %v1599_v48, %s1668_s15 }
 0xebe   :  { %1600 = vtanh.f32 %v924_v6  ;;  %v1481_v28 = vmul.f32 -1.442695, %v924_v6 }
 0xec0   :  { %1602 = vpow2.f32 %v1481_v28 }
 0xec4   :  { %v1601_v49 = vpop.eup %1600 }
 0xec5   :  { %947 = vrot.lane.b32.xlu2 %v1601_v49, %s1668_s15 }
 0xec6   :  { %v1603_v50 = vpop.eup %1602 }
 0xec7   :  { %v928_v17 = vadd.f32 1.0, %v1603_v50 }
 0xec9   :  { %1604 = vrcp.f32 %v928_v17  ;;  %v940_v33 = vand.u32 2147483648, %v928_v17  ;;  %vm934_vm8 = vweird.f32 %v928_v17  ;;  %v938_v34 = vand.u32 2147483647, %v928_v17 }
 0xeca   :  { %1606 = vpow2.f32 %v1482_v51 }
 0xecb   :  { %v941_v37 = vor.u32 1.1754944e-38, %v940_v33  ;;  %vm939_vm10 = vcmp.eq.f32.partialorder %v938_v34, 8.507059e+37 }
 0xecf   :  { %v1605_v29 = vpop.eup %1604 }
 0xed0   :  { %v1607_v54 = vpop.eup %1606  ;;  %v930_v7 = vmul.f32 %v1605_v29, %v928_v17  ;;  %vm935_vm0 = vweird.f32 %v1605_v29 }
 0xed1   :  { %v965_v8 = vadd.f32 1.0, %v1607_v54  ;;  %vm936_vm9 = vmor %vm934_vm8, %vm935_vm0 }
 0xed2   :  { %v931_v30 = vsub.f32 1.0, %v930_v7 }
 0xed3   :  { %1608 = vrcp.f32 %v965_v8  ;;  %v977_v52 = vand.u32 2147483648, %v965_v8  ;;  %vm971_vm12 = vweird.f32 %v965_v8  ;;  %v975_v53 = vand.u32 2147483647, %v965_v8 }
 0xed4   :  { %v932_v10 = vmul.f32 %v1605_v29, %v931_v30 }
 0xed5   :  { %v978_v56 = vor.u32 1.1754944e-38, %v977_v52  ;;  %vm976_vm14 = vcmp.eq.f32.partialorder %v975_v53, 8.507059e+37 }
 0xed6   :  { %v933_v31 = vadd.f32 %v1605_v29, %v932_v10 }
 0xed8   :  { %v937_v35 = vsel %vm936_vm9, %v1605_v29, %v933_v31 }
 0xed9   :  { %v1609_v32 = vpop.eup %1608  ;;  %v942_v39 = vsel %vm939_vm10, %v941_v37, %v937_v35 }
 0xeda   :  { %v967_v36 = vmul.f32 %v1609_v32, %v965_v8  ;;  %vm972_vm11 = vweird.f32 %v1609_v32  ;;  %v945_v43 = vmul.f32 %v942_v39, %v2133_v4 }
 0xedb   :  { %vm973_vm13 = vmor %vm971_vm12, %vm972_vm11 }
 0xedc   :  { %v968_v41 = vsub.f32 1.0, %v967_v36 }
 0xede   :  { %v969_v42 = vmul.f32 %v1609_v32, %v968_v41 }
 0xee0   :  { %v970_v44 = vadd.f32 %v1609_v32, %v969_v42 }
 0xee2   :  { %v974_v55 = vsel %vm973_vm13, %v1609_v32, %v970_v44  ;;  %vm1210_vm13 = vcmask 785408  }
 0xee3   :  { %v979_v59 = vsel %vm976_vm14, %v978_v56, %v974_v55 }
 0xee4   :  { %v982_v63 = vmul.f32 %v979_v59, %v2138_v15 }
 0xf1f   :  { %v948_v38 = vpop.permute.xlu2 %947 }
 0xf20   :  { %v950_v40 = vmul.f32 %v948_v38, %v942_v39 }
 0xf22   :  { %952 = vrot.lane.b32.xlu1 %v950_v40, %s1668_s15 }
 0xf2f   :  { %v985_v58 = vpop.permute.xlu0 %984 }
 0xf30   :  { %v987_v62 = vmul.f32 %v985_v58, %v979_v59 }
 0xf32   :  { %989 = vrot.lane.b32.xlu2 %v987_v62, %s1668_s15 }
 0xf8c   :  { %v990_v0 = vpop.permute.xlu2 %989 }
 0xf8d   :  { %v2173_v9 = vadd.f32 %v990_v0, %v982_v63 }
 0xf8f   :  { %1610 = vtanh.f32 %v2173_v9 }
 0xf94   :  { %v953_v12 = vpop.permute.xlu1 %952 }
 0xf95   :  { %v1611_v16 = vpop.eup %1610  ;;  %v2177_v18 = vadd.f32 %v953_v12, %v945_v43 }
 0xf96   :  { %995 = vrot.lane.b32.xlu1 %v1611_v16, %s1668_s15 }
 0xf97   :  { %1612 = vtanh.f32 %v2177_v18 }
 0xf9d   :  { %v1613_v22 = vpop.eup %1612 }
 0xf9e   :  { %958 = vrot.lane.b32.xlu0 %v1613_v22, %s1668_s15 }
0x1008   :  { %v996_v13 = vpop.permute.xlu1 %995 }
0x1009   :  { %v998_v15 = vmul.f32 %v996_v13, %v979_v59 }
0x100b   :  { %1004 = vrot.lane.b32.xlu0 %v998_v15, %s1670_s3 }
0x1010   :  { %v959_v61 = vpop.permute.xlu0 %958 }
0x1011   :  { %v961_v23 = vmul.f32 %v959_v61, %v942_v39 }
0x1013   :  { %1000 = vrot.lane.b32.xlu2 %v961_v23, %s1669_s17 }
0x106d   :  { %v1001_v4 = vpop.permute.xlu2 %1000 }
0x107d   :  { %v2184_v25 = vpop.permute.xlu0 %1004 }
0x107e   :  { %v1007_v24 = vsel %vm164_vm1, %v1001_v4, %v2184_v25 }
0x107f   :  { %1483 = vmatmul.msk.f32.vlgmr.msra.gmra.mxu1 %vm171_vm2, %v1007_v24  ;;  %1484 = vmatmul.msk.f32.vlgmr.msra.gmra.mxu2 %vm171_vm2, %v1007_v24  ;;  %v1497_v24 = vpack.i.bf16 %v2151_v57, %v1979_v11 }
0x10fc   :  { %v1028_v27 = vpop.f32.mrf.mxu1 }
0x10fd   :  { %v1029_v2 = vadd.f32 %v1028_v27, %v1840_v19 }
0x10ff   :  { %v1051_v3 = vadd.f32 %v1029_v2, %v135_v1 }
0x1101   :  { %1614 = vtanh.f32 %v1051_v3  ;;  %v1485_v14 = vmul.f32 -1.442695, %v1051_v3 }
0x1102   :  { %v1048_v5 = vpop.f32.mrf.mxu2 }
0x1103   :  { %v1049_v46 = vadd.f32 %v1048_v5, %v1960_v60 }
0x1105   :  { %1616 = vtanh.f32 %v1049_v46  ;;  %v1486_v6 = vmul.f32 -1.442695, %v1049_v46 }
0x1107   :  { %v1615_v47 = vpop.eup %1614  ;;  %1618 = vpow2.f32 %v1486_v6 }
0x1108   :  { %1074 = vrot.lane.b32.xlu1 %v1615_v47, %s1668_s15 }
0x110b   :  { %v1617_v48 = vpop.eup %1616 }
0x110c   :  { %1111 = vrot.lane.b32.xlu2 %v1617_v48, %s1668_s15 }
0x110d   :  { %v1619_v49 = vpop.eup %1618 }
0x110e   :  { %v1092_v28 = vadd.f32 1.0, %v1619_v49 }
0x1110   :  { %1620 = vrcp.f32 %v1092_v28  ;;  %v1104_v7 = vand.u32 2147483648, %v1092_v28  ;;  %vm1098_vm3 = vweird.f32 %v1092_v28  ;;  %v1102_v8 = vand.u32 2147483647, %v1092_v28 }
0x1111   :  { %1622 = vpow2.f32 %v1485_v14 }
0x1112   :  { %v1105_v31 = vor.u32 1.1754944e-38, %v1104_v7  ;;  %vm1103_vm5 = vcmp.eq.f32.partialorder %v1102_v8, 8.507059e+37  ;;  %v1278_v7 = vld [vmem:[#allocation2 + $0x1f8] sm:$0xff]  ;;  %v1243_v8 = vld [vmem:[#allocation2 + $0xe0] sm:$0xff] }
0x1113   :  { %1339 = vmatpush.msrb.mxu3 %v1278_v7  ;;  %v1218_v7 = vld [vmem:[#allocation2 + $0x18] sm:$0xff] }
0x1116   :  { %v1621_v45 = vpop.eup %1620 }
0x1117   :  { %v1094_v19 = vmul.f32 %v1621_v45, %v1092_v28  ;;  %v1623_v50 = vpop.eup %1622  ;;  %vm1099_vm15 = vweird.f32 %v1621_v45 }
0x1118   :  { %v1055_v51 = vadd.f32 1.0, %v1623_v50  ;;  %vm1100_vm4 = vmor %vm1098_vm3, %vm1099_vm15 }
0x1119   :  { %v1095_v17 = vsub.f32 1.0, %v1094_v19 }
0x111a   :  { %1624 = vrcp.f32 %v1055_v51  ;;  %v1067_v39 = vand.u32 2147483648, %v1055_v51  ;;  %vm1061_vm7 = vweird.f32 %v1055_v51  ;;  %v1065_v40 = vand.u32 2147483647, %v1055_v51 }
0x111b   :  { %v1096_v29 = vmul.f32 %v1621_v45, %v1095_v17 }
0x111c   :  { %v1068_v42 = vor.u32 1.1754944e-38, %v1067_v39  ;;  %vm1066_vm8 = vcmp.eq.f32.partialorder %v1065_v40, 8.507059e+37  ;;  %v1272_v39 = vld [vmem:[#allocation2 + $0x1c8] sm:$0xff]  ;;  %v1237_v40 = vld [vmem:[#allocation2 + $0xb0] sm:$0xff] }
0x111d   :  { %v1097_v54 = vadd.f32 %v1621_v45, %v1096_v29  ;;  %v1277_v29 = vld [vmem:[#allocation2 + $0x1f0] sm:$0xff] }
0x111e   :  { %1299 = vmatpush.msrb.mxu1 %v1277_v29  ;;  %v1217_v29 = vld [vmem:[#allocation2 + $0x10] sm:$0xff] }
0x111f   :  { %v1101_v30 = vsel %vm1100_vm4, %v1621_v45, %v1097_v54  ;;  %v1246_v54 = vld [vmem:[#allocation2 + $0xf8] sm:$0xff] }
0x1120   :  { %v1625_v10 = vpop.eup %1624  ;;  %v1106_v33 = vsel %vm1103_vm5, %v1105_v31, %v1101_v30  ;;  %v1275_v30 = vld [vmem:[#allocation2 + $0x1e0] sm:$0xff]  ;;  %1319 = vmatpush.msrb.mxu2 %v1246_v54  ;;  %v1276_v31 = vld [vmem:[#allocation2 + $0x1e8] sm:$0xff]  ;;  %v1249_v54 = vld [vmem:[#allocation2 + $0x110] sm:$0xff] }
0x1121   :  { %v1057_v35 = vmul.f32 %v1625_v10, %v1055_v51  ;;  %vm1062_vm6 = vweird.f32 %v1625_v10  ;;  %v1109_v55 = vmul.f32 %v1106_v33, %v2173_v9  ;;  %v1245_v51 = vld [vmem:[#allocation2 + $0xf0] sm:$0xff]  ;;  %1300 = vmatpush.msrb.mxu1 %v1275_v30  ;;  %1340 = vmatpush.msrb.mxu3 %v1276_v31  ;;  %v1215_v30 = vld [vmem:[#allocation2] sm:$0xff]  ;;  %v1216_v31 = vld [vmem:[#allocation2 + $0x8] sm:$0xff] }
0x1122   :  { %vm1063_vm0 = vmor %vm1061_vm7, %vm1062_vm6  ;;  %1279 = vmatpush.msra.mxu0 %v1245_v51 }
0x1123   :  { %v1058_v36 = vsub.f32 1.0, %v1057_v35  ;;  %v1274_v35 = vld [vmem:[#allocation2 + $0x1d8] sm:$0xff] }
0x1124   :  { %1280 = vmatpush.msra.mxu0 %v1243_v8  ;;  %1341 = vmatpush.msrb.mxu3 %v1274_v35  ;;  %v1250_v8 = vld [vmem:[#allocation2 + $0x118] sm:$0xff] }
0x1125   :  { %v1059_v37 = vmul.f32 %v1625_v10, %v1058_v36  ;;  %v1239_v36 = vld [vmem:[#allocation2 + $0xc0] sm:$0xff] }
0x1126   :  { %1342 = vmatpush.msrb.mxu3 %v1272_v39 }
0x1127   :  { %v1060_v38 = vadd.f32 %v1625_v10, %v1059_v37  ;;  %v1271_v37 = vld [vmem:[#allocation2 + $0x1c0] sm:$0xff] }
0x1129   :  { %v1064_v41 = vsel %vm1063_vm0, %v1625_v10, %v1060_v38  ;;  %v1244_v10 = vld [vmem:[#allocation2 + $0xe8] sm:$0xff] }
0x112a   :  { %v1069_v52 = vsel %vm1066_vm8, %v1068_v42, %v1064_v41  ;;  %1320 = vmatpush.msrb.mxu2 %v1244_v10  ;;  %v1240_v38 = vld [vmem:[#allocation2 + $0xc8] sm:$0xff]  ;;  %v1269_v41 = vld [vmem:[#allocation2 + $0x1b0] sm:$0xff]  ;;  %v1238_v42 = vld [vmem:[#allocation2 + $0xb8] sm:$0xff] }
0x112b   :  { %v1072_v62 = vmul.f32 %v1069_v52, %v2177_v18  ;;  %v1247_v10 = vld [vmem:[#allocation2 + $0x100] sm:$0xff] }
0x1166   :  { %v1112_v32 = vpop.permute.xlu2 %1111 }
0x1167   :  { %v1114_v34 = vmul.f32 %v1112_v32, %v1106_v33  ;;  %v1241_v32 = vld [vmem:[#allocation2 + $0xd0] sm:$0xff] }
0x1168   :  { %1281 = vmatpush.msra.mxu0 %v1241_v32  ;;  %v1248_v32 = vld [vmem:[#allocation2 + $0x108] sm:$0xff] }
0x1169   :  { %1116 = vrot.lane.b32.xlu1 %v1114_v34, %s1668_s15  ;;  %v1242_v34 = vld [vmem:[#allocation2 + $0xd8] sm:$0xff] }
0x116a   :  { %1321 = vmatpush.msrb.mxu2 %v1242_v34  ;;  %1282 = vmatpush.msra.mxu0 %v1239_v36 }
0x116c   :  { %1322 = vmatpush.msrb.mxu2 %v1240_v38  ;;  %1283 = vmatpush.msra.mxu0 %v1237_v40 }
0x116e   :  { %1323 = vmatpush.msrb.mxu2 %v1238_v42 }
0x117a   :  { %v1075_v44 = vpop.permute.xlu1 %1074 }
0x117b   :  { %v1077_v53 = vmul.f32 %v1075_v44, %v1069_v52  ;;  %v1270_v44 = vld [vmem:[#allocation2 + $0x1b8] sm:$0xff] }
0x117c   :  { %1343 = vmatpush.msrb.mxu3 %v1270_v44 }
0x117d   :  { %1079 = vrot.lane.b32.xlu0 %v1077_v53, %s1668_s15  ;;  %v1267_v53 = vld [vmem:[#allocation2 + $0x1a0] sm:$0xff] }
0x11db   :  { %v1117_v56 = vpop.permute.xlu1 %1116 }
0x11dc   :  { %v1119_v58 = vadd.f32 %v1117_v56, %v1109_v55  ;;  %v1236_v55 = vld [vmem:[#allocation2 + $0xa8] sm:$0xff] }
0x11dd   :  { %v1268_v56 = vld [vmem:[#allocation2 + $0x1a8] sm:$0xff]  ;;  %1324 = vmatpush.msrb.mxu2 %v1236_v55 }
0x11de   :  { %1626 = vtanh.f32 %v1119_v58  ;;  %1344 = vmatpush.msrb.mxu3 %v1268_v56  ;;  %v1375_v56 = vld [vmem:[%s2300_s8 + $0x28] sm:$0xff] }
0x11e4   :  { %v1627_v59 = vpop.eup %1626 }
0x11e5   :  { %1122 = vrot.lane.b32.xlu0 %v1627_v59, %s1668_s15  ;;  %v1265_v59 = vld [vmem:[#allocation2 + $0x190] sm:$0xff] }
0x11ef   :  { %v1080_v63 = vpop.permute.xlu0 %1079 }
0x11f0   :  { %v1082_v0 = vadd.f32 %v1080_v63, %v1072_v62  ;;  %v1234_v62 = vld [vmem:[#allocation2 + $0x98] sm:$0xff] }
0x11f1   :  { %v1266_v63 = vld [vmem:[#allocation2 + $0x198] sm:$0xff]  ;;  %1325 = vmatpush.msrb.mxu2 %v1234_v62  ;;  %v1372_v62 = vld [vmem:[%s2300_s8 + $0x10] sm:$0xff] }
0x11f2   :  { %1628 = vtanh.f32 %v1082_v0  ;;  %v1231_v0 = vld [vmem:[#allocation2 + $0x80] sm:$0xff]  ;;  %1345 = vmatpush.msrb.mxu3 %v1266_v63  ;;  %v1371_v63 = vld [vmem:[%s2300_s8 + $0x8] sm:$0xff] }
0x11f8   :  { %v1629_v43 = vpop.eup %1628 }
0x11f9   :  { %1085 = vrot.lane.b32.xlu2 %v1629_v43, %s1668_s15  ;;  %v1263_v43 = vld [vmem:[#allocation2 + $0x180] sm:$0xff] }
0x1253   :  { %v1086_v12 = vpop.permute.xlu2 %1085 }
0x1254   :  { %v1088_v16 = vmul.f32 %v1086_v12, %v1069_v52  ;;  %v1235_v52 = vld [vmem:[#allocation2 + $0xa0] sm:$0xff]  ;;  %v1232_v12 = vld [vmem:[#allocation2 + $0x88] sm:$0xff] }
0x1255   :  { %1284 = vmatpush.msra.mxu0 %v1235_v52  ;;  %1326 = vmatpush.msrb.mxu2 %v1232_v12  ;;  %v1412_v12 = vld [vmem:[%s2302_s10 + $0x30] sm:$0xff] }
0x1256   :  { %1127 = vrot.lane.b32.xlu1 %v1088_v16, %s1669_s17  ;;  %v1264_v16 = vld [vmem:[#allocation2 + $0x188] sm:$0xff] }
0x1257   :  { %v1123_v22 = vpop.permute.xlu0 %1122  ;;  %1346 = vmatpush.msrb.mxu3 %v1264_v16  ;;  %v1411_v16 = vld [vmem:[%s2302_s10 + $0x28] sm:$0xff] }
0x1258   :  { %v2203_v9 = vmul.f32 %v1123_v22, %v1106_v33  ;;  %v1273_v33 = vld [vmem:[#allocation2 + $0x1d0] sm:$0xff] }
0x1259   :  { %1301 = vmatpush.msrb.mxu1 %v1273_v33  ;;  %v1229_v22 = vld [vmem:[#allocation2 + $0x70] sm:$0xff] }
0x125a   :  { %1131 = vrot.lane.b32.xlu2 %v2203_v9, %s1670_s3 }
0x125b   :  { %1302 = vmatpush.msrb.mxu1 %v1271_v37 }
0x125d   :  { %1303 = vmatpush.msrb.mxu1 %v1269_v41 }
0x125f   :  { %1304 = vmatpush.msrb.mxu1 %v1267_v53 }
0x1261   :  { %1305 = vmatpush.msrb.mxu1 %v1265_v59  ;;  %v1373_v59 = vld [vmem:[%s2300_s8 + $0x18] sm:$0xff] }
0x1263   :  { %1306 = vmatpush.msrb.mxu1 %v1263_v43  ;;  %v1413_v43 = vld [vmem:[%s2302_s10 + $0x38] sm:$0xff] }
0x12b4   :  { %v1132_v13 = vpop.permute.xlu2 %1131 }
0x12c8   :  { %v1128_v15 = vpop.permute.xlu1 %1127 }
0x12c9   :  { %v1134_v18 = vsel %vm164_vm1, %v1128_v15, %v1132_v13  ;;  %v1261_v13 = vld [vmem:[#allocation2 + $0x170] sm:$0xff]  ;;  %v1230_v15 = vld [vmem:[#allocation2 + $0x78] sm:$0xff] }
0x12ca   :  { %1487 = vmatmul.msk.f32.vlgmr.msra.gmra.mxu3 %vm171_vm2, %v1134_v18  ;;  %v1262_v18 = vld [vmem:[#allocation2 + $0x178] sm:$0xff]  ;;  %1307 = vmatpush.msrb.mxu1 %v1261_v13 }
0x12cb   :  { %1327 = vmatpush.msrb.mxu2 %v1230_v15  ;;  %1347 = vmatpush.msrb.mxu3 %v1262_v18  ;;  %v1409_v13 = vld [vmem:[%s2302_s10 + $0x18] sm:$0xff] }
0x134d   :  { %v1155_v61 = vpop.f32.mrf.mxu3 }
0x134e   :  { %v1156_v23 = vadd.f32 %v1155_v61, %v1960_v60  ;;  %v1227_v61 = vld [vmem:[#allocation2 + $0x60] sm:$0xff] }
0x1350   :  { %1630 = vtanh.f32 %v1156_v23  ;;  %v1488_v27 = vmul.f32 -1.442695, %v1156_v23  ;;  %v1259_v23 = vld [vmem:[#allocation2 + $0x160] sm:$0xff] }
0x1351   :  { %1308 = vmatpush.msrb.mxu1 %v1259_v23 }
0x1352   :  { %1632 = vpow2.f32 %v1488_v27  ;;  %v1225_v27 = vld [vmem:[#allocation2 + $0x50] sm:$0xff] }
0x1356   :  { %v1631_v4 = vpop.eup %1630 }
0x1357   :  { %1180 = vrot.lane.b32.xlu0 %v1631_v4, %s1668_s15  ;;  %v1228_v4 = vld [vmem:[#allocation2 + $0x68] sm:$0xff] }
0x1358   :  { %v1633_v1 = vpop.eup %1632  ;;  %1328 = vmatpush.msrb.mxu2 %v1228_v4 }
0x1359   :  { %v1161_v2 = vadd.f32 1.0, %v1633_v1  ;;  %v1257_v1 = vld [vmem:[#allocation2 + $0x150] sm:$0xff] }
0x135a   :  { %1309 = vmatpush.msrb.mxu1 %v1257_v1  ;;  %v1406_v1 = vld [vmem:[%s2302_s10] sm:$0xff] }
0x135b   :  { %1634 = vrcp.f32 %v1161_v2  ;;  %v1173_v60 = vand.u32 2147483648, %v1161_v2  ;;  %vm1167_vm10 = vweird.f32 %v1161_v2  ;;  %v1171_v6 = vand.u32 2147483647, %v1161_v2 }
0x135d   :  { %v1174_v28 = vor.u32 1.1754944e-38, %v1173_v60  ;;  %vm1172_vm12 = vcmp.eq.f32.partialorder %v1171_v6, 8.507059e+37  ;;  %v1221_v60 = vld [vmem:[#allocation2 + $0x30] sm:$0xff] }
0x135e   :  { %v1253_v6 = vld [vmem:[#allocation2 + $0x130] sm:$0xff] }
0x135f   :  { %1498 = vrot.lane.b32.xlu0 %v1497_v24, %s1669_s17  ;;  %v1260_v24 = vld [vmem:[#allocation2 + $0x168] sm:$0xff] }
0x1360   :  { %1348 = vmatpush.msrb.mxu3 %v1260_v24  ;;  %v1408_v24 = vld [vmem:[%s2302_s10 + $0x10] sm:$0xff] }
0x1361   :  { %v1635_v3 = vpop.eup %1634 }
0x1362   :  { %v1163_v5 = vmul.f32 %v1635_v3, %v1161_v2  ;;  %vm1168_vm9 = vweird.f32 %v1635_v3  ;;  %v1226_v2 = vld [vmem:[#allocation2 + $0x58] sm:$0xff] }
0x1363   :  { %vm1169_vm11 = vmor %vm1167_vm10, %vm1168_vm9  ;;  %1329 = vmatpush.msrb.mxu2 %v1226_v2  ;;  %v1508_v2 = vld [vmem:[%s2301_s9] ss:$0 sm:$0xff] }
0x1364   :  { %v1164_v46 = vsub.f32 1.0, %v1163_v5  ;;  %v1223_v5 = vld [vmem:[#allocation2 + $0x40] sm:$0xff] }
0x1366   :  { %v1165_v47 = vmul.f32 %v1635_v3, %v1164_v46  ;;  %v1255_v46 = vld [vmem:[#allocation2 + $0x140] sm:$0xff] }
0x1367   :  { %1310 = vmatpush.msrb.mxu1 %v1255_v46 }
0x1368   :  { %v1166_v48 = vadd.f32 %v1635_v3, %v1165_v47  ;;  %v1224_v47 = vld [vmem:[#allocation2 + $0x48] sm:$0xff] }
0x1369   :  { %1330 = vmatpush.msrb.mxu2 %v1224_v47  ;;  %1311 = vmatpush.msrb.mxu1 %v1253_v6  ;;  %v1509_v47 = vld [vmem:[%s2303_s11] ss:$0 sm:$0xff] }
0x136a   :  { %v1170_v49 = vsel %vm1169_vm11, %v1635_v3, %v1166_v48  ;;  %v1258_v3 = vld [vmem:[#allocation2 + $0x158] sm:$0xff]  ;;  %v1256_v48 = vld [vmem:[#allocation2 + $0x148] sm:$0xff] }
0x136b   :  { %v2214_v57 = vsel %vm1172_vm12, %v1174_v28, %v1170_v49  ;;  %1349 = vmatpush.msrb.mxu3 %v1258_v3  ;;  %v1222_v49 = vld [vmem:[#allocation2 + $0x38] sm:$0xff] }
0x136c   :  { %v1178_v45 = vmul.f32 %v2214_v57, %v1119_v58  ;;  %v1233_v58 = vld [vmem:[#allocation2 + $0x90] sm:$0xff]  ;;  %v1254_v28 = vld [vmem:[#allocation2 + $0x138] sm:$0xff]  ;;  %1331 = vmatpush.msrb.mxu2 %v1222_v49 }
0x136d   :  { %1285 = vmatpush.msra.mxu0 %v1233_v58  ;;  %1350 = vmatpush.msrb.mxu3 %v1256_v48  ;;  %v1374_v58 = vld [vmem:[%s2300_s8 + $0x20] sm:$0xff] }
0x136f   :  { %1286 = vmatpush.msra.mxu0 %v1231_v0  ;;  %1351 = vmatpush.msrb.mxu3 %v1254_v28  ;;  %v1370_v0 = vld [vmem:[%s2300_s8] sm:$0xff] }
0x1371   :  { %1287 = vmatpush.msra.mxu0 %v1229_v22  ;;  %v1410_v22 = vld [vmem:[%s2302_s10 + $0x20] sm:$0xff] }
0x1373   :  { %1288 = vmatpush.msra.mxu0 %v1227_v61 }
0x1375   :  { %1289 = vmatpush.msra.mxu0 %v1225_v27  ;;  %v1407_v27 = vld [vmem:[%s2302_s10 + $0x8] sm:$0xff] }
0x1377   :  { %1290 = vmatpush.msra.mxu0 %v1223_v5 }
0x1379   :  { %1291 = vmatpush.msra.mxu0 %v1221_v60 }
0x13c9   :  { %v1181_v11 = vpop.permute.xlu0 %1180 }
0x13ca   :  { %v1183_v14 = vmul.f32 %v1181_v11, %v2214_v57  ;;  %v1219_v11 = vld [vmem:[#allocation2 + $0x20] sm:$0xff] }
0x13cb   :  { %1292 = vmatpush.msra.mxu0 %v1219_v11 }
0x13cc   :  { %1185 = vrot.lane.b32.xlu1 %v1183_v14, %s1668_s15  ;;  %v1251_v14 = vld [vmem:[#allocation2 + $0x120] sm:$0xff] }
0x13cd   :  { %1312 = vmatpush.msrb.mxu1 %v1251_v14  ;;  %1293 = vmatpush.msra.mxu0 %v1217_v29 }
0x13cf   :  { %1313 = vmatpush.msrb.mxu1 %v1249_v54  ;;  %1294 = vmatpush.msra.mxu0 %v1215_v30 }
0x13d1   :  { %1314 = vmatpush.msrb.mxu1 %v1247_v10 }
0x13d3   :  { %1429 = vmatpush.msra.mxu1 %v1413_v43 }
0x13d5   :  { %1430 = vmatpush.msra.mxu1 %v1412_v12 }
0x13d7   :  { %1431 = vmatpush.msra.mxu1 %v1411_v16 }
0x13d9   :  { %1432 = vmatpush.msra.mxu1 %v1410_v22 }
0x13db   :  { %1433 = vmatpush.msra.mxu1 %v1409_v13 }
0x13dd   :  { %1434 = vmatpush.msra.mxu1 %v1408_v24 }
0x13df   :  { %1435 = vmatpush.msra.mxu1 %v1407_v27 }
0x13e1   :  { %1436 = vmatpush.msra.mxu1 %v1406_v1 }
0x143e   :  { %v1186_v19 = vpop.permute.xlu1 %1185 }
0x143f   :  { %v1188_v50 = vadd.f32 %v1186_v19, %v1178_v45  ;;  %v1220_v45 = vld [vmem:[#allocation2 + $0x28] sm:$0xff] }
0x1440   :  { %v1252_v19 = vld [vmem:[#allocation2 + $0x128] sm:$0xff]  ;;  %1332 = vmatpush.msrb.mxu2 %v1220_v45 }
0x1441   :  { %1636 = vtanh.f32 %v1188_v50  ;;  %1352 = vmatpush.msrb.mxu3 %v1252_v19 }
0x1442   :  { %1333 = vmatpush.msrb.mxu2 %v1218_v7 }
0x1443   :  { %1353 = vmatpush.msrb.mxu3 %v1250_v8 }
0x1444   :  { %1334 = vmatpush.msrb.mxu2 %v1216_v31 }
0x1445   :  { %1354 = vmatpush.msrb.mxu3 %v1248_v32 }
0x1447   :  { %v1637_v17 = vpop.eup %1636 }
0x1448   :  { %1191 = vrot.lane.b32.xlu2 %v1637_v17, %s1668_s15 }
0x14a2   :  { %v1192_v50 = vpop.permute.xlu2 %1191 }
0x14a3   :  { %v1194_v17 = vmul.f32 %v1192_v50, %v2214_v57  ;;  %v1499_v57 = vpop.permute.xlu0 %1498 }
0x14a4   :  { %v1500_v33 = vunpack.i.l.bf16 %v1499_v57 }
0x14a5   :  { %v1502_v51 = vpack.i.bf16 %v1194_v17, %v2113_v21  ;;  %v1501_v21 = vunpack.i.h.bf16 %v1499_v57 }
0x14a6   :  { %v1208_v35 = vsel %vm164_vm1, %v1500_v33, %v2029_v26 }
0x14a7   :  { %1503 = vrot.lane.b32.xlu1 %v1502_v51, %s1668_s15  ;;  %v1212_v34 = vsel %vm164_vm1, %v1501_v21, %v2184_v25  ;;  %v1209_v39 = vsel %vm171_vm2, %v1208_v35, %v2068_v20  ;;  %v1377_v20 = vld [vmem:[%s2300_s8 + $0x38] sm:$0xff] }
0x14a8   :  { %v1213_v40 = vsel %vm171_vm2, %v1212_v34, %v2203_v9  ;;  %v1376_v9 = vld [vmem:[%s2300_s8 + $0x30] sm:$0xff]  ;;  %1393 = vmatpush.msrb.mxu0 %v1377_v20 }
0x14aa   :  { %1394 = vmatpush.msrb.mxu0 %v1376_v9 }
0x14ac   :  { %1395 = vmatpush.msrb.mxu0 %v1375_v56 }
0x14ae   :  { %1396 = vmatpush.msrb.mxu0 %v1374_v58 }
0x14b0   :  { %1397 = vmatpush.msrb.mxu0 %v1373_v59 }
0x14b2   :  { %1398 = vmatpush.msrb.mxu0 %v1372_v62 }
0x14b4   :  { %1399 = vmatpush.msrb.mxu0 %v1371_v63 }
0x14b6   :  { %1400 = vmatpush.msrb.mxu0 %v1370_v0 }
0x1519   :  { %v1504_v36 = vpop.permute.xlu1 %1503 }
0x151a   :  { %v1506_v37 = vunpack.i.h.bf16 %v1504_v36  ;;  %v1505_v38 = vunpack.i.l.bf16 %v1504_v36 }
0x151c   :  { %v1211_v41 = vsel %vm1210_vm13, %v1209_v39, %v1505_v38  ;;  %v1214_v42 = vsel %vm1210_vm13, %v1213_v40, %v1506_v37 }
0x151d   :  { %1295 = vmatmul.f32.vlgmr.msra.gmra.mxu0 %v1211_v41  ;;  %1315 = vmatmul.f32.vlgmr.msrb.gmra.mxu1 %v1214_v42 }
0x151e   :  { %1335 = vmatmul.f32.vlgmr.msrb.gmra.mxu2 %v1211_v41  ;;  %1355 = vmatmul.f32.vlgmr.msrb.gmra.mxu3 %v1214_v42 }
0x159a   :  { %v1296_v25 = vpop.f32.mrf.mxu0  ;;  %v1316_v44 = vpop.f32.mrf.mxu1 }
0x159b   :  { %v1317_v52 = vadd.f32 %v1316_v44, %v1296_v25 }
0x159d   :  { %1360 = vrot.lane.b32.xlu2 %v1317_v52, %s1669_s17 }
0x15a1   :  { %v1336_v26 = vpop.f32.mrf.mxu2  ;;  %v1356_v53 = vpop.f32.mrf.mxu3 }
0x15a2   :  { %v1357_v55 = vadd.f32 %v1356_v53, %v1336_v26 }
0x15a4   :  { %1365 = vrot.lane.b32.xlu0 %v1357_v55, %s1669_s17 }
0x15f7   :  { %v1361_v15 = vpop.permute.xlu2 %1360 }
0x15f8   :  { %v1363_v61 = vmax.f32 %v1317_v52, %v1361_v15 }
0x1616   :  { %v1366_v18 = vpop.permute.xlu0 %1365 }
0x1617   :  { %v1368_v23 = vmax.f32 %v1357_v55, %v1366_v18 }
0x1619   :  { %v1369_v4 = vmax.f32 %v1363_v61, %v1368_v23 }
0x161b   :  { %1489 = vmatmul.msk.f32.vlgmr.msrb.gmra.mxu0 %vm171_vm2, %v1369_v4 }
0x1698   :  { %v1402_v3 = vpop.f32.mrf.mxu0 }
0x1699   :  { %v1403_v5 = vadd.f32 %v1508_v2, %v1402_v3 }
0x169b   :  { %v1405_v46 = vmax.f32 %v1403_v5, 0.0 }
0x169d   :  { %1490 = vmatmul.msk.f32.vlgmr.msra.gmra.mxu1 %vm171_vm2, %v1405_v46 }
0x171a   :  { %v1438_v48 = vpop.f32.mrf.mxu1 }
0x171b   :  { %v1439_v60 = vadd.f32 %v1509_v47, %v1438_v48 }
0x171d   :  { %1441 = vst [vmem:[%s2304_s12] sm:$0xff] %v1439_v60 }
0x171e   :  { %1446 = vsyncpa [#allocation3], 1 }

</bundles_post_ra>
